<compile_context>
chip_gen: v6e
topology: v6e:2x2x1
jax: 0.10.0
libtpu: 0.0.40
codegen_flags: <defaults>
</compile_context>

<pallas_src>
import functools
import math

import jax
import jax.numpy as jnp
from jax import lax
from jax.experimental import pallas as pl
from jax.experimental.pallas import tpu as pltpu


def _round_up(x, m):
    return ((x + m - 1) // m) * m


# ---------------------------------------------------------------------------
# Linear (optional bias, optional ReLU), tiled over rows and output columns
# ---------------------------------------------------------------------------
def _linear_kernel(*refs, act, has_bias):
    if has_bias:
        x_ref, w_ref, b_ref, o_ref = refs
    else:
        x_ref, w_ref, o_ref = refs
        b_ref = None
    y = jnp.dot(x_ref[...].astype(jnp.bfloat16), w_ref[...],
                preferred_element_type=jnp.float32)
    if has_bias:
        y = y + b_ref[...]                      # (1, bn) broadcasts over rows
    if act == "relu":
        y = jnp.maximum(y, 0.0)
    o_ref[...] = y.astype(o_ref.dtype)


def pallas_linear(x, w, b=None, act=None, out_dtype=jnp.float32,
                  block_m=512, block_n=2048):
    """x: (M, K), w: (K, Nout) consumed as bf16, b: (Nout,) or None -> (M, Nout)."""
    M, K = x.shape
    Nout = w.shape[1]
    block_m = min(block_m, _round_up(M, 8))
    Mp = _round_up(M, block_m)
    if Mp != M:
        x = jnp.pad(x, ((0, Mp - M), (0, 0)))
    # tile the output dim only when it divides evenly (keeps the resident weight slab
    # small on 64 MiB-VMEM parts); otherwise keep the full (K, Nout) weight resident
    bn = block_n if (block_n < Nout and Nout % block_n == 0) else Nout
    has_bias = b is not None

    in_specs = [
        pl.BlockSpec((block_m, K), lambda i, j: (i, 0)),
        pl.BlockSpec((K, bn), lambda i, j: (0, j)),
    ]
    args = [x, w.astype(jnp.bfloat16)]
    if has_bias:
        in_specs.append(pl.BlockSpec((1, bn), lambda i, j: (0, j)))
        args.append(b.reshape(1, Nout).astype(jnp.float32))

    out = pl.pallas_call(
        functools.partial(_linear_kernel, act=act, has_bias=has_bias),
        out_shape=jax.ShapeDtypeStruct((Mp, Nout), out_dtype),
        grid_spec=pltpu.PrefetchScalarGridSpec(
            num_scalar_prefetch=0,
            grid=(Mp // block_m, Nout // bn),
            in_specs=in_specs,
            out_specs=pl.BlockSpec((block_m, bn), lambda i, j: (i, j)),
        ),
        compiler_params=pltpu.CompilerParams(
            dimension_semantics=("parallel", "parallel")),
    )(*args)
    return out[:M] if Mp != M else out


# ---------------------------------------------------------------------------
# Fused: y = x @ W + b ; z = res + y ; LayerNorm(z)  (post-norm epilogue)
# ---------------------------------------------------------------------------
def _linear_add_ln_kernel(x_ref, w_ref, b_ref, r_ref, g_ref, be_ref, o_ref, *, eps):
    y = jnp.dot(x_ref[...].astype(jnp.bfloat16), w_ref[...],
                preferred_element_type=jnp.float32)
    z = r_ref[...] + y + b_ref[...]
    mu = jnp.mean(z, axis=-1, keepdims=True)
    zc = z - mu
    var = jnp.mean(zc * zc, axis=-1, keepdims=True)        # two-pass (PyTorch-style)
    zn = zc * lax.rsqrt(var + eps)
    o_ref[...] = (zn * g_ref[...] + be_ref[...]).astype(o_ref.dtype)


def pallas_linear_add_ln(x, w, b, res, gamma, beta, eps=1e-5, block_m=512):
    """Fused (res + (x @ w + b)) -> LayerNorm over last dim. x: (M, K), res: (M, D) f32."""
    M, K = x.shape
    D = w.shape[1]
    block_m = min(block_m, _round_up(M, 8))
    Mp = _round_up(M, block_m)
    if Mp != M:
        x = jnp.pad(x, ((0, Mp - M), (0, 0)))
        res = jnp.pad(res, ((0, Mp - M), (0, 0)))
    out = pl.pallas_call(
        functools.partial(_linear_add_ln_kernel, eps=eps),
        out_shape=jax.ShapeDtypeStruct((Mp, D), jnp.float32),
        grid_spec=pltpu.PrefetchScalarGridSpec(
            num_scalar_prefetch=0,
            grid=(Mp // block_m,),
            in_specs=[
                pl.BlockSpec((block_m, K), lambda i: (i, 0)),
                pl.BlockSpec((K, D), lambda i: (0, 0)),
                pl.BlockSpec((1, D), lambda i: (0, 0)),
                pl.BlockSpec((block_m, D), lambda i: (i, 0)),
                pl.BlockSpec((1, D), lambda i: (0, 0)),
                pl.BlockSpec((1, D), lambda i: (0, 0)),
            ],
            out_specs=pl.BlockSpec((block_m, D), lambda i: (i, 0)),
        ),
        compiler_params=pltpu.CompilerParams(dimension_semantics=("parallel",)),
    )(x, w.astype(jnp.bfloat16), b.reshape(1, D).astype(jnp.float32),
      res, gamma.reshape(1, D), beta.reshape(1, D))
    return out[:M] if Mp != M else out


# ---------------------------------------------------------------------------
# Multi-head causal self-attention, grid = (batch, head), causal mask in-kernel
# ---------------------------------------------------------------------------
def _mha_kernel(q_ref, k_ref, v_ref, o_ref, *, scale):
    T, Dh = q_ref.shape[-2], q_ref.shape[-1]
    q = q_ref[...].reshape(T, Dh).astype(jnp.bfloat16)
    k = k_ref[...].reshape(T, Dh).astype(jnp.bfloat16)
    v = v_ref[...].reshape(T, Dh).astype(jnp.bfloat16)
    s = lax.dot_general(q, k, (((1,), (1,)), ((), ())),
                        preferred_element_type=jnp.float32) * scale
    # causal (subsequent) mask built in-kernel: row i attends to cols <= i
    row = lax.broadcasted_iota(jnp.int32, (T, T), 0)
    col = lax.broadcasted_iota(jnp.int32, (T, T), 1)
    s = jnp.where(col <= row, s, -1e30)
    s = s - jnp.max(s, axis=-1, keepdims=True)
    p = jnp.exp(s)                                          # f32 (EUP)
    p = p * pl.reciprocal(jnp.sum(p, axis=-1, keepdims=True), approx=True)
    o = jnp.dot(p.astype(jnp.bfloat16), v, preferred_element_type=jnp.float32)
    o_ref[...] = o.reshape(o_ref.shape).astype(o_ref.dtype)


def pallas_mha(qkv, nhead, scale, out_dtype=jnp.bfloat16):
    """qkv: (N, T, 3D) packed [q|k|v] projection output -> (N, T, D)."""
    N, T, D3 = qkv.shape
    D = D3 // 3
    Dh = D // nhead
    kernel = functools.partial(_mha_kernel, scale=scale)

    if Dh % 128 == 0:
        # Fast path: per-head lane slabs sliced straight off the packed QKV buffer via
        # head-granular BlockSpecs; each head writes its own lane-aligned output slab.
        return pl.pallas_call(
            kernel,
            out_shape=jax.ShapeDtypeStruct((N, T, D), out_dtype),
            grid_spec=pltpu.PrefetchScalarGridSpec(
                num_scalar_prefetch=0,
                grid=(N, nhead),
                in_specs=[
                    pl.BlockSpec((1, T, Dh), lambda n, h: (n, 0, h)),              # Q
                    pl.BlockSpec((1, T, Dh), lambda n, h: (n, 0, nhead + h)),      # K
                    pl.BlockSpec((1, T, Dh), lambda n, h: (n, 0, 2 * nhead + h)),  # V
                ],
                out_specs=pl.BlockSpec((1, T, Dh), lambda n, h: (n, 0, h)),
            ),
            compiler_params=pltpu.CompilerParams(
                dimension_semantics=("parallel", "parallel")),
        )(qkv, qkv, qkv)

    # Fallback (head dim not lane-aligned): split heads once at JAX level so every
    # kernel block is full-last-dim (Dh) and lane-legal.
    qkv5 = qkv.reshape(N, T, 3, nhead, Dh).transpose(2, 0, 3, 1, 4)   # (3, N, H, T, Dh)
    q, k, v = qkv5[0], qkv5[1], qkv5[2]
    out = pl.pallas_call(
        kernel,
        out_shape=jax.ShapeDtypeStruct((N, nhead, T, Dh), out_dtype),
        grid_spec=pltpu.PrefetchScalarGridSpec(
            num_scalar_prefetch=0,
            grid=(N, nhead),
            in_specs=[pl.BlockSpec((1, 1, T, Dh), lambda n, h: (n, h, 0, 0))] * 3,
            out_specs=pl.BlockSpec((1, 1, T, Dh), lambda n, h: (n, h, 0, 0)),
        ),
        compiler_params=pltpu.CompilerParams(
            dimension_semantics=("parallel", "parallel")),
    )(q, k, v)
    return out.transpose(0, 2, 1, 3).reshape(N, T, D)


# ---------------------------------------------------------------------------
# RNNT joint: output(tanh(enc[:,:,None,:] + dec[:,None,:,:])), grid (N, Ti, V tiles)
# ---------------------------------------------------------------------------
def _joint_kernel(enc_ref, dec_ref, w_ref, o_ref):
    enc = enc_ref[0].astype(jnp.float32)        # (tile_ti, J)
    dec = dec_ref[0].astype(jnp.float32)        # (To1, J)
    tile_ti, J = enc.shape
    To1 = dec.shape[0]
    h = jnp.tanh(enc[:, None, :] + dec[None, :, :])         # (tile_ti, To1, J) f32
    # Single un-batched contraction against the resident (J, tile_v) bf16 weight.
    # The leading-dim merge is layout-free when To1 % 8 == 0 (full sublane tiles).
    y = jnp.dot(h.reshape(tile_ti * To1, J).astype(jnp.bfloat16), w_ref[...],
                preferred_element_type=jnp.float32)          # (tile_ti*To1, tile_v)
    o_ref[0] = y.reshape(tile_ti, To1, -1).astype(o_ref.dtype)


def pallas_joint(enc_proj_out, dec_proj_out, w_out, tile_ti=32, tile_v=2048,
                 out_dtype=jnp.float32):
    """enc_proj_out: (N,Ti,J), dec_proj_out: (N,To1,J), w_out: (J,V) -> (N,Ti,To1,V)."""
    N, Ti, J = enc_proj_out.shape
    To1 = dec_proj_out.shape[1]
    V = w_out.shape[1]
    tile_ti = min(tile_ti, Ti)
    Tip = _round_up(Ti, tile_ti)
    if Tip != Ti:
        enc_proj_out = jnp.pad(enc_proj_out, ((0, 0), (0, Tip - Ti), (0, 0)))
    tv = tile_v if (tile_v < V and V % tile_v == 0) else V
    out = pl.pallas_call(
        _joint_kernel,
        out_shape=jax.ShapeDtypeStruct((N, Tip, To1, V), out_dtype),
        grid_spec=pltpu.PrefetchScalarGridSpec(
            num_scalar_prefetch=0,
            grid=(N, Tip // tile_ti, V // tv),
            in_specs=[
                pl.BlockSpec((1, tile_ti, J), lambda n, t, v: (n, t, 0)),
                pl.BlockSpec((1, To1, J), lambda n, t, v: (n, 0, 0)),
                pl.BlockSpec((J, tv), lambda n, t, v: (0, v)),
            ],
            out_specs=pl.BlockSpec((1, tile_ti, To1, tv),
                                   lambda n, t, v: (n, t, 0, v)),
        ),
        compiler_params=pltpu.CompilerParams(
            dimension_semantics=("parallel", "parallel", "parallel")),
    )(enc_proj_out, dec_proj_out, w_out.astype(jnp.bfloat16))
    return out[:, :Ti] if Tip != Ti else out


# ---------------------------------------------------------------------------
# Glue: params, positional encoding, transformer layer, full forward
# ---------------------------------------------------------------------------
def sin_pos_encoding(T, D):
    pos = jnp.arange(T, dtype=jnp.float32)[:, None]
    inv = jnp.exp(-jnp.arange(0, D, 2, dtype=jnp.float32) * (math.log(10000.0) / D))
    pe = jnp.zeros((T, D), jnp.float32)
    pe = pe.at[:, 0::2].set(jnp.sin(pos * inv))
    pe = pe.at[:, 1::2].set(jnp.cos(pos * inv))
    return pe


def init_params(key, vocab, att_dim, enc_dim, jot_dim, num_layers, ffn_dim):
    # NOTE: for best TPU layout, pick att_dim/ffn_dim/jot_dim/vocab as multiples of 128
    # and att_dim // nhead a multiple of 128 (lane-dense stores, full MXU pushes).
    keys = list(jax.random.split(key, 4 * num_layers + 8))
    kit = iter(keys)

    def dense(shape, fan_in):   # matmul weights stored bf16 (halves weight DMA)
        w = jax.random.normal(next(kit), shape, jnp.float32) / math.sqrt(fan_in)
        return w.astype(jnp.bfloat16)

    p = {"embed": jax.random.normal(next(kit), (vocab, att_dim), jnp.float32)}
    layers = []
    for _ in range(num_layers):
        layers.append({
            "in_w": dense((att_dim, 3 * att_dim), att_dim),
            "in_b": jnp.zeros((3 * att_dim,), jnp.float32),
            "out_w": dense((att_dim, att_dim), att_dim),
            "out_b": jnp.zeros((att_dim,), jnp.float32),
            "ffn1_w": dense((att_dim, ffn_dim), att_dim),
            "ffn1_b": jnp.zeros((ffn_dim,), jnp.float32),
            "ffn2_w": dense((ffn_dim, att_dim), ffn_dim),
            "ffn2_b": jnp.zeros((att_dim,), jnp.float32),
            "ln1_g": jnp.ones((att_dim,), jnp.float32),
            "ln1_b": jnp.zeros((att_dim,), jnp.float32),
            "ln2_g": jnp.ones((att_dim,), jnp.float32),
            "ln2_b": jnp.zeros((att_dim,), jnp.float32),
        })
    p["layers"] = layers
    p["enc_proj_w"] = dense((enc_dim, jot_dim), enc_dim)       # nn.Linear(bias=False)
    p["dec_proj_w"] = dense((att_dim, jot_dim), att_dim)
    p["dec_proj_b"] = jnp.zeros((jot_dim,), jnp.float32)
    p["out_w"] = dense((jot_dim, vocab), jot_dim)              # nn.Linear(bias=False)
    return p


def xfmr_encoder_layer(x, lp, nhead):
    """Post-norm PyTorch-style TransformerEncoderLayer (ReLU FFN, eval mode)."""
    N, T, D = x.shape
    x2d = x.reshape(N * T, D)

    # packed QKV projection, stored bf16 (MHA matmuls consume bf16 anyway)
    qkv = pallas_linear(x2d, lp["in_w"], lp["in_b"],
                        out_dtype=jnp.bfloat16).reshape(N, T, 3 * D)
    attn = pallas_mha(qkv, nhead, 1.0 / math.sqrt(D // nhead))   # (N, T, D) bf16

    # out_proj fused with residual add + LayerNorm1 (f32 residual/LN math)
    x1 = pallas_linear_add_ln(attn.reshape(N * T, D), lp["out_w"], lp["out_b"],
                              x2d, lp["ln1_g"], lp["ln1_b"])

    # FFN: linear+relu (bf16 activation), then ffn2 fused with residual + LayerNorm2
    h = pallas_linear(x1, lp["ffn1_w"], lp["ffn1_b"], act="relu",
                      out_dtype=jnp.bfloat16)
    x2 = pallas_linear_add_ln(h, lp["ffn2_w"], lp["ffn2_b"],
                              x1, lp["ln2_g"], lp["ln2_b"])
    return x2.reshape(N, T, D)


def transformer_decoder_forward(params, enc_out, tgt_pad, nhead):
    """
    enc_out : (N, Ti, D_enc) float32
    tgt_pad : (N, To+1) int32
    returns : (N, Ti, To+1, V) float32
    """
    N, Ti, D_enc = enc_out.shape
    To1 = tgt_pad.shape[1]
    D = params["embed"].shape[1]

    # vocab_embed + abs positional encoding (x * sqrt(D) + sinusoid), dropout=identity
    emb = params["embed"][tgt_pad]                               # (N, To1, D)
    x = emb * math.sqrt(D) + sin_pos_encoding(To1, D)[None, :, :]

    # TODO(synk): tgt_len / src_key_padding_mask not implemented (tgt_len=None path)
    for lp in params["layers"]:
        x = xfmr_encoder_layer(x, lp, nhead)                     # (N, To1, D)

    # projections into joint space (stored bf16; joint kernel upcasts for tanh math)
    jot = params["enc_proj_w"].shape[1]
    enc_proj = pallas_linear(enc_out.reshape(N * Ti, D_enc), params["enc_proj_w"],
                             out_dtype=jnp.bfloat16).reshape(N, Ti, jot)   # no bias
    dec_proj = pallas_linear(x.reshape(N * To1, D), params["dec_proj_w"],
                             params["dec_proj_b"],
                             out_dtype=jnp.bfloat16).reshape(N, To1, jot)

    # joint network: output(tanh(enc[:,:,None,:] + dec[:,None,:,:]))
    return pallas_joint(enc_proj, dec_proj, params["out_w"])


# ---------------------------------------------------------------------------
# Main
# ---------------------------------------------------------------------------
if __name__ == "__main__":
    # small shapes consistent with the module; dims are multiples of 128 and
    # head_dim = att_dim // nhead = 128 so all stores are lane-dense.
    N, Ti, To1 = 2, 8, 8
    vocab_size = 128
    att_dim = 256            # decoder (transformer) dim
    enc_dim = 256            # encoder dim
    jot_dim = 256            # joint dim
    num_layers = 2
    nhead = 2                # head_dim = 128
    ffn_dim = 512

    key = jax.random.PRNGKey(0)
    kp, ke, kt = jax.random.split(key, 3)

    params = init_params(kp, vocab_size, att_dim, enc_dim, jot_dim, num_layers, ffn_dim)
    enc_out = jax.random.normal(ke, (N, Ti, enc_dim), jnp.float32)
    tgt_pad = jax.random.randint(kt, (N, To1), 0, vocab_size, dtype=jnp.int32)

    fwd = jax.jit(transformer_decoder_forward, static_argnums=(3,))
    out = jax.block_until_ready(fwd(params, enc_out, tgt_pad, nhead))

    assert out.shape == (N, Ti, To1, vocab_size), out.shape
    assert out.dtype == jnp.float32
    assert bool(jnp.all(jnp.isfinite(out)))
    print("KERNEL_OK")
</pallas_src>

<mosaic_0001>
module attributes {stable_mosaic.version = 11 : i64} {
  func.func @_linear_kernel(%arg0: i32, %arg1: i32, %arg2: memref<16x256xf32, #tpu.memory_space<vmem>>, %arg3: memref<256x768xbf16, #tpu.memory_space<vmem>>, %arg4: memref<1x768xf32, #tpu.memory_space<vmem>>, %arg5: memref<16x768xbf16, #tpu.memory_space<vmem>>) attributes {dimension_semantics = [#tpu.dimension_semantics<parallel>, #tpu.dimension_semantics<parallel>], iteration_bounds = array<i64: 1, 1>, scalar_prefetch = 0 : i64, scratch_operands = 0 : i64, tpu.core_type = #tpu.core_type<tc>, window_params = [{transform_indices = @transform_0, window_bounds = array<i64: 16, 256>}, {transform_indices = @transform_1, window_bounds = array<i64: 256, 768>}, {transform_indices = @transform_2, window_bounds = array<i64: 1, 768>}, {transform_indices = @transform_3, window_bounds = array<i64: 16, 768>}]} {
    %c0 = arith.constant 0 : index
    %c0_0 = arith.constant 0 : index
    %0 = vector.load %arg2[%c0, %c0_0] : memref<16x256xf32, #tpu.memory_space<vmem>>, vector<16x256xf32>
    %1 = arith.truncf %0 : vector<16x256xf32> to vector<16x256xbf16>
    %c0_1 = arith.constant 0 : index
    %c0_2 = arith.constant 0 : index
    %2 = vector.load %arg3[%c0_1, %c0_2] : memref<256x768xbf16, #tpu.memory_space<vmem>>, vector<256x768xbf16>
    %cst = arith.constant dense<0.000000e+00> : vector<16x768xf32>
    %3 = tpu.matmul %1, %2, %cst {dimension_numbers = #tpu.dot_dimension_numbers<[1], [0], [0], [1], [0, 0, 1, 1], [], []>} : vector<16x256xbf16>, vector<256x768xbf16>, vector<16x768xf32> -> vector<16x768xf32>
    %c0_3 = arith.constant 0 : index
    %c0_4 = arith.constant 0 : index
    %4 = vector.load %arg4[%c0_3, %c0_4] : memref<1x768xf32, #tpu.memory_space<vmem>>, vector<1x768xf32>
    %5 = vector.broadcast %4 : vector<1x768xf32> to vector<16x768xf32>
    %6 = arith.addf %3, %5 : vector<16x768xf32>
    %7 = arith.truncf %6 : vector<16x768xf32> to vector<16x768xbf16>
    %c0_5 = arith.constant 0 : index
    %c0_6 = arith.constant 0 : index
    %8 = vector.load %arg5[%c0_5, %c0_6] : memref<16x768xbf16, #tpu.memory_space<vmem>>, vector<16x768xbf16>
    tpu.vector_store %arg5[%c0_5, %c0_6], %7 {strides = array<i32>} : memref<16x768xbf16, #tpu.memory_space<vmem>>, vector<16x768xbf16>,
    return
  }
  func.func @transform_0(%arg0: i32, %arg1: i32) -> (i32, i32) {
    %c0_i32 = arith.constant 0 : i32
    %c0_i32_0 = arith.constant 0 : i32
    return %arg0, %c0_i32 : i32, i32
  }
  func.func @transform_1(%arg0: i32, %arg1: i32) -> (i32, i32) {
    %c0_i32 = arith.constant 0 : i32
    %c0_i32_0 = arith.constant 0 : i32
    return %c0_i32, %arg1 : i32, i32
  }
  func.func @transform_2(%arg0: i32, %arg1: i32) -> (i32, i32) {
    %c0_i32 = arith.constant 0 : i32
    %c0_i32_0 = arith.constant 0 : i32
    return %c0_i32, %arg1 : i32, i32
  }
  func.func @transform_3(%arg0: i32, %arg1: i32) -> (i32, i32) {
    %c0_i32 = arith.constant 0 : i32
    return %arg0, %arg1 : i32, i32
  }
}

module attributes {stable_mosaic.version = 11 : i64} {
  func.func @_mha_kernel(%arg0: i32, %arg1: i32, %arg2: memref<1x8x128xbf16, #tpu.memory_space<vmem>>, %arg3: memref<1x8x128xbf16, #tpu.memory_space<vmem>>, %arg4: memref<1x8x128xbf16, #tpu.memory_space<vmem>>, %arg5: memref<1x8x128xbf16, #tpu.memory_space<vmem>>) attributes {dimension_semantics = [#tpu.dimension_semantics<parallel>, #tpu.dimension_semantics<parallel>], iteration_bounds = array<i64: 2, 2>, scalar_prefetch = 0 : i64, scratch_operands = 0 : i64, tpu.core_type = #tpu.core_type<tc>, window_params = [{transform_indices = @transform_0, window_bounds = array<i64: 1, 8, 128>}, {transform_indices = @transform_1, window_bounds = array<i64: 1, 8, 128>}, {transform_indices = @transform_2, window_bounds = array<i64: 1, 8, 128>}, {transform_indices = @transform_3, window_bounds = array<i64: 1, 8, 128>}]} {
    %c0 = arith.constant 0 : index
    %c0_0 = arith.constant 0 : index
    %c0_1 = arith.constant 0 : index
    %0 = vector.load %arg2[%c0, %c0_0, %c0_1] : memref<1x8x128xbf16, #tpu.memory_space<vmem>>, vector<1x8x128xbf16>
    %1 = vector.shape_cast %0 : vector<1x8x128xbf16> to vector<8x128xbf16>
    %c0_2 = arith.constant 0 : index
    %c0_3 = arith.constant 0 : index
    %c0_4 = arith.constant 0 : index
    %2 = vector.load %arg3[%c0_2, %c0_3, %c0_4] : memref<1x8x128xbf16, #tpu.memory_space<vmem>>, vector<1x8x128xbf16>
    %3 = vector.shape_cast %2 : vector<1x8x128xbf16> to vector<8x128xbf16>
    %c0_5 = arith.constant 0 : index
    %c0_6 = arith.constant 0 : index
    %c0_7 = arith.constant 0 : index
    %4 = vector.load %arg4[%c0_5, %c0_6, %c0_7] : memref<1x8x128xbf16, #tpu.memory_space<vmem>>, vector<1x8x128xbf16>
    %5 = vector.shape_cast %4 : vector<1x8x128xbf16> to vector<8x128xbf16>
    %cst = arith.constant dense<0.000000e+00> : vector<8x8xf32>
    %6 = tpu.matmul %1, %3, %cst {dimension_numbers = #tpu.dot_dimension_numbers<[1], [1], [0], [0], [0, 0, 1, 0], [], []>} : vector<8x128xbf16>, vector<8x128xbf16>, vector<8x8xf32> -> vector<8x8xf32>
    %cst_8 = arith.constant 0.0883883461 : f32
    %7 = vector.broadcast %cst_8 : f32 to vector<8x8xf32>
    %8 = arith.mulf %6, %7 : vector<8x8xf32>
    %9 = tpu.iota {dimensions = array<i32: 0>} : vector<8x8xi32>
    %10 = tpu.iota {dimensions = array<i32: 1>} : vector<8x8xi32>
    %11 = arith.cmpi sle, %10, %9 : vector<8x8xi32>
    %cst_9 = arith.constant -1.000000e+30 : f32
    %12 = vector.broadcast %cst_9 : f32 to vector<8x8xf32>
    %13 = arith.select %11, %8, %12 : vector<8x8xi1>, vector<8x8xf32>
    %cst_10 = arith.constant dense<0xFF800000> : vector<8xf32>
    %14 = vector.multi_reduction <maximumf>, %13, %cst_10 [1] : vector<8x8xf32> to vector<8xf32>
    %15 = vector.shape_cast %14 : vector<8xf32> to vector<8x1xf32>
    %16 = vector.broadcast %15 : vector<8x1xf32> to vector<8x8xf32>
    %17 = arith.subf %13, %16 : vector<8x8xf32>
    %18 = math.exp %17 : vector<8x8xf32>
    %cst_11 = arith.constant dense<0.000000e+00> : vector<8xf32>
    %19 = vector.multi_reduction <add>, %18, %cst_11 [1] : vector<8x8xf32> to vector<8xf32>
    %20 = vector.shape_cast %19 : vector<8xf32> to vector<8x1xf32>
    %21 = tpu.reciprocal %20 {approx = true} : vector<8x1xf32> -> vector<8x1xf32>
    %22 = vector.broadcast %21 : vector<8x1xf32> to vector<8x8xf32>
    %23 = arith.mulf %18, %22 : vector<8x8xf32>
    %24 = arith.truncf %23 : vector<8x8xf32> to vector<8x8xbf16>
    %cst_12 = arith.constant dense<0.000000e+00> : vector<8x128xf32>
    %25 = tpu.matmul %24, %5, %cst_12 {dimension_numbers = #tpu.dot_dimension_numbers<[1], [0], [0], [1], [0, 0, 1, 1], [], []>} : vector<8x8xbf16>, vector<8x128xbf16>, vector<8x128xf32> -> vector<8x128xf32>
    %26 = vector.shape_cast %25 : vector<8x128xf32> to vector<1x8x128xf32>
    %27 = arith.truncf %26 : vector<1x8x128xf32> to vector<1x8x128xbf16>
    %c0_13 = arith.constant 0 : index
    %c0_14 = arith.constant 0 : index
    %c0_15 = arith.constant 0 : index
    %28 = vector.load %arg5[%c0_13, %c0_14, %c0_15] : memref<1x8x128xbf16, #tpu.memory_space<vmem>>, vector<1x8x128xbf16>
    tpu.vector_store %arg5[%c0_13, %c0_14, %c0_15], %27 {strides = array<i32>} : memref<1x8x128xbf16, #tpu.memory_space<vmem>>, vector<1x8x128xbf16>,
    return
  }
  func.func @transform_0(%arg0: i32, %arg1: i32) -> (i32, i32, i32) {
    %c0_i32 = arith.constant 0 : i32
    %c0_i32_0 = arith.constant 0 : i32
    return %arg0, %c0_i32, %arg1 : i32, i32, i32
  }
  func.func @transform_1(%arg0: i32, %arg1: i32) -> (i32, i32, i32) {
    %c2_i32 = arith.constant 2 : i32
    %0 = arith.addi %c2_i32, %arg1 : i32
    %c0_i32 = arith.constant 0 : i32
    %c0_i32_0 = arith.constant 0 : i32
    return %arg0, %c0_i32, %0 : i32, i32, i32
  }
  func.func @transform_2(%arg0: i32, %arg1: i32) -> (i32, i32, i32) {
    %c4_i32 = arith.constant 4 : i32
    %0 = arith.addi %c4_i32, %arg1 : i32
    %c0_i32 = arith.constant 0 : i32
    %c0_i32_0 = arith.constant 0 : i32
    return %arg0, %c0_i32, %0 : i32, i32, i32
  }
  func.func @transform_3(%arg0: i32, %arg1: i32) -> (i32, i32, i32) {
    %c0_i32 = arith.constant 0 : i32
    %c0_i32_0 = arith.constant 0 : i32
    return %arg0, %c0_i32, %arg1 : i32, i32, i32
  }
}

module attributes {stable_mosaic.version = 11 : i64} {
  func.func @_linear_add_ln_kernel(%arg0: i32, %arg1: memref<16x256xbf16, #tpu.memory_space<vmem>>, %arg2: memref<256x256xbf16, #tpu.memory_space<vmem>>, %arg3: memref<1x256xf32, #tpu.memory_space<vmem>>, %arg4: memref<16x256xf32, #tpu.memory_space<vmem>>, %arg5: memref<1x256xf32, #tpu.memory_space<vmem>>, %arg6: memref<1x256xf32, #tpu.memory_space<vmem>>, %arg7: memref<16x256xf32, #tpu.memory_space<vmem>>) attributes {dimension_semantics = [#tpu.dimension_semantics<parallel>], iteration_bounds = array<i64: 1>, scalar_prefetch = 0 : i64, scratch_operands = 0 : i64, tpu.core_type = #tpu.core_type<tc>, window_params = [{transform_indices = @transform_0, window_bounds = array<i64: 16, 256>}, {pipeline_mode = #tpu.pipeline_mode<synchronous>, transform_indices = @transform_1, window_bounds = array<i64: 256, 256>}, {pipeline_mode = #tpu.pipeline_mode<synchronous>, transform_indices = @transform_2, window_bounds = array<i64: 1, 256>}, {transform_indices = @transform_3, window_bounds = array<i64: 16, 256>}, {pipeline_mode = #tpu.pipeline_mode<synchronous>, transform_indices = @transform_4, window_bounds = array<i64: 1, 256>}, {pipeline_mode = #tpu.pipeline_mode<synchronous>, transform_indices = @transform_5, window_bounds = array<i64: 1, 256>}, {transform_indices = @transform_6, window_bounds = array<i64: 16, 256>}]} {
    %c0 = arith.constant 0 : index
    %c0_0 = arith.constant 0 : index
    %0 = vector.load %arg1[%c0, %c0_0] : memref<16x256xbf16, #tpu.memory_space<vmem>>, vector<16x256xbf16>
    %c0_1 = arith.constant 0 : index
    %c0_2 = arith.constant 0 : index
    %1 = vector.load %arg2[%c0_1, %c0_2] : memref<256x256xbf16, #tpu.memory_space<vmem>>, vector<256x256xbf16>
    %cst = arith.constant dense<0.000000e+00> : vector<16x256xf32>
    %2 = tpu.matmul %0, %1, %cst {dimension_numbers = #tpu.dot_dimension_numbers<[1], [0], [0], [1], [0, 0, 1, 1], [], []>} : vector<16x256xbf16>, vector<256x256xbf16>, vector<16x256xf32> -> vector<16x256xf32>
    %c0_3 = arith.constant 0 : index
    %c0_4 = arith.constant 0 : index
    %3 = vector.load %arg4[%c0_3, %c0_4] : memref<16x256xf32, #tpu.memory_space<vmem>>, vector<16x256xf32>
    %4 = arith.addf %3, %2 : vector<16x256xf32>
    %c0_5 = arith.constant 0 : index
    %c0_6 = arith.constant 0 : index
    %5 = vector.load %arg3[%c0_5, %c0_6] : memref<1x256xf32, #tpu.memory_space<vmem>>, vector<1x256xf32>
    %6 = vector.broadcast %5 : vector<1x256xf32> to vector<16x256xf32>
    %7 = arith.addf %4, %6 : vector<16x256xf32>
    %cst_7 = arith.constant dense<0.000000e+00> : vector<16xf32>
    %8 = vector.multi_reduction <add>, %7, %cst_7 [1] : vector<16x256xf32> to vector<16xf32>
    %9 = vector.shape_cast %8 : vector<16xf32> to vector<16x1xf32>
    %cst_8 = arith.constant 2.560000e+02 : f32
    %10 = vector.broadcast %cst_8 : f32 to vector<16x1xf32>
    %11 = arith.divf %9, %10 : vector<16x1xf32>
    %12 = vector.broadcast %11 : vector<16x1xf32> to vector<16x256xf32>
    %13 = arith.subf %7, %12 : vector<16x256xf32>
    %14 = arith.mulf %13, %13 : vector<16x256xf32>
    %cst_9 = arith.constant dense<0.000000e+00> : vector<16xf32>
    %15 = vector.multi_reduction <add>, %14, %cst_9 [1] : vector<16x256xf32> to vector<16xf32>
    %16 = vector.shape_cast %15 : vector<16xf32> to vector<16x1xf32>
    %cst_10 = arith.constant 2.560000e+02 : f32
    %17 = vector.broadcast %cst_10 : f32 to vector<16x1xf32>
    %18 = arith.divf %16, %17 : vector<16x1xf32>
    %cst_11 = arith.constant 9.99999974E-6 : f32
    %19 = vector.broadcast %cst_11 : f32 to vector<16x1xf32>
    %20 = arith.addf %18, %19 : vector<16x1xf32>
    %21 = math.rsqrt %20 : vector<16x1xf32>
    %22 = vector.broadcast %21 : vector<16x1xf32> to vector<16x256xf32>
    %23 = arith.mulf %13, %22 : vector<16x256xf32>
    %c0_12 = arith.constant 0 : index
    %c0_13 = arith.constant 0 : index
    %24 = vector.load %arg5[%c0_12, %c0_13] : memref<1x256xf32, #tpu.memory_space<vmem>>, vector<1x256xf32>
    %25 = vector.broadcast %24 : vector<1x256xf32> to vector<16x256xf32>
    %26 = arith.mulf %23, %25 : vector<16x256xf32>
    %c0_14 = arith.constant 0 : index
    %c0_15 = arith.constant 0 : index
    %27 = vector.load %arg6[%c0_14, %c0_15] : memref<1x256xf32, #tpu.memory_space<vmem>>, vector<1x256xf32>
    %28 = vector.broadcast %27 : vector<1x256xf32> to vector<16x256xf32>
    %29 = arith.addf %26, %28 : vector<16x256xf32>
    %c0_16 = arith.constant 0 : index
    %c0_17 = arith.constant 0 : index
    %30 = vector.load %arg7[%c0_16, %c0_17] : memref<16x256xf32, #tpu.memory_space<vmem>>, vector<16x256xf32>
    tpu.vector_store %arg7[%c0_16, %c0_17], %29 {strides = array<i32>} : memref<16x256xf32, #tpu.memory_space<vmem>>, vector<16x256xf32>,
    return
  }
  func.func @transform_0(%arg0: i32) -> (i32, i32) {
    %c0_i32 = arith.constant 0 : i32
    %c0_i32_0 = arith.constant 0 : i32
    return %arg0, %c0_i32 : i32, i32
  }
  func.func @transform_1(%arg0: i32) -> (i32, i32) {
    %c0_i32 = arith.constant 0 : i32
    %c0_i32_0 = arith.constant 0 : i32
    %c0_i32_1 = arith.constant 0 : i32
    return %c0_i32, %c0_i32_0 : i32, i32
  }
  func.func @transform_2(%arg0: i32) -> (i32, i32) {
    %c0_i32 = arith.constant 0 : i32
    %c0_i32_0 = arith.constant 0 : i32
    %c0_i32_1 = arith.constant 0 : i32
    return %c0_i32, %c0_i32_0 : i32, i32
  }
  func.func @transform_3(%arg0: i32) -> (i32, i32) {
    %c0_i32 = arith.constant 0 : i32
    %c0_i32_0 = arith.constant 0 : i32
    return %arg0, %c0_i32 : i32, i32
  }
  func.func @transform_4(%arg0: i32) -> (i32, i32) {
    %c0_i32 = arith.constant 0 : i32
    %c0_i32_0 = arith.constant 0 : i32
    %c0_i32_1 = arith.constant 0 : i32
    return %c0_i32, %c0_i32_0 : i32, i32
  }
  func.func @transform_5(%arg0: i32) -> (i32, i32) {
    %c0_i32 = arith.constant 0 : i32
    %c0_i32_0 = arith.constant 0 : i32
    %c0_i32_1 = arith.constant 0 : i32
    return %c0_i32, %c0_i32_0 : i32, i32
  }
  func.func @transform_6(%arg0: i32) -> (i32, i32) {
    %c0_i32 = arith.constant 0 : i32
    %c0_i32_0 = arith.constant 0 : i32
    return %arg0, %c0_i32 : i32, i32
  }
}

module attributes {stable_mosaic.version = 11 : i64} {
  func.func @_linear_add_ln_kernel(%arg0: i32, %arg1: memref<16x512xbf16, #tpu.memory_space<vmem>>, %arg2: memref<512x256xbf16, #tpu.memory_space<vmem>>, %arg3: memref<1x256xf32, #tpu.memory_space<vmem>>, %arg4: memref<16x256xf32, #tpu.memory_space<vmem>>, %arg5: memref<1x256xf32, #tpu.memory_space<vmem>>, %arg6: memref<1x256xf32, #tpu.memory_space<vmem>>, %arg7: memref<16x256xf32, #tpu.memory_space<vmem>>) attributes {dimension_semantics = [#tpu.dimension_semantics<parallel>], iteration_bounds = array<i64: 1>, scalar_prefetch = 0 : i64, scratch_operands = 0 : i64, tpu.core_type = #tpu.core_type<tc>, window_params = [{transform_indices = @transform_0, window_bounds = array<i64: 16, 512>}, {pipeline_mode = #tpu.pipeline_mode<synchronous>, transform_indices = @transform_1, window_bounds = array<i64: 512, 256>}, {pipeline_mode = #tpu.pipeline_mode<synchronous>, transform_indices = @transform_2, window_bounds = array<i64: 1, 256>}, {transform_indices = @transform_3, window_bounds = array<i64: 16, 256>}, {pipeline_mode = #tpu.pipeline_mode<synchronous>, transform_indices = @transform_4, window_bounds = array<i64: 1, 256>}, {pipeline_mode = #tpu.pipeline_mode<synchronous>, transform_indices = @transform_5, window_bounds = array<i64: 1, 256>}, {transform_indices = @transform_6, window_bounds = array<i64: 16, 256>}]} {
    %c0 = arith.constant 0 : index
    %c0_0 = arith.constant 0 : index
    %0 = vector.load %arg1[%c0, %c0_0] : memref<16x512xbf16, #tpu.memory_space<vmem>>, vector<16x512xbf16>
    %c0_1 = arith.constant 0 : index
    %c0_2 = arith.constant 0 : index
    %1 = vector.load %arg2[%c0_1, %c0_2] : memref<512x256xbf16, #tpu.memory_space<vmem>>, vector<512x256xbf16>
    %cst = arith.constant dense<0.000000e+00> : vector<16x256xf32>
    %2 = tpu.matmul %0, %1, %cst {dimension_numbers = #tpu.dot_dimension_numbers<[1], [0], [0], [1], [0, 0, 1, 1], [], []>} : vector<16x512xbf16>, vector<512x256xbf16>, vector<16x256xf32> -> vector<16x256xf32>
    %c0_3 = arith.constant 0 : index
    %c0_4 = arith.constant 0 : index
    %3 = vector.load %arg4[%c0_3, %c0_4] : memref<16x256xf32, #tpu.memory_space<vmem>>, vector<16x256xf32>
    %4 = arith.addf %3, %2 : vector<16x256xf32>
    %c0_5 = arith.constant 0 : index
    %c0_6 = arith.constant 0 : index
    %5 = vector.load %arg3[%c0_5, %c0_6] : memref<1x256xf32, #tpu.memory_space<vmem>>, vector<1x256xf32>
    %6 = vector.broadcast %5 : vector<1x256xf32> to vector<16x256xf32>
    %7 = arith.addf %4, %6 : vector<16x256xf32>
    %cst_7 = arith.constant dense<0.000000e+00> : vector<16xf32>
    %8 = vector.multi_reduction <add>, %7, %cst_7 [1] : vector<16x256xf32> to vector<16xf32>
    %9 = vector.shape_cast %8 : vector<16xf32> to vector<16x1xf32>
    %cst_8 = arith.constant 2.560000e+02 : f32
    %10 = vector.broadcast %cst_8 : f32 to vector<16x1xf32>
    %11 = arith.divf %9, %10 : vector<16x1xf32>
    %12 = vector.broadcast %11 : vector<16x1xf32> to vector<16x256xf32>
    %13 = arith.subf %7, %12 : vector<16x256xf32>
    %14 = arith.mulf %13, %13 : vector<16x256xf32>
    %cst_9 = arith.constant dense<0.000000e+00> : vector<16xf32>
    %15 = vector.multi_reduction <add>, %14, %cst_9 [1] : vector<16x256xf32> to vector<16xf32>
    %16 = vector.shape_cast %15 : vector<16xf32> to vector<16x1xf32>
    %cst_10 = arith.constant 2.560000e+02 : f32
    %17 = vector.broadcast %cst_10 : f32 to vector<16x1xf32>
    %18 = arith.divf %16, %17 : vector<16x1xf32>
    %cst_11 = arith.constant 9.99999974E-6 : f32
    %19 = vector.broadcast %cst_11 : f32 to vector<16x1xf32>
    %20 = arith.addf %18, %19 : vector<16x1xf32>
    %21 = math.rsqrt %20 : vector<16x1xf32>
    %22 = vector.broadcast %21 : vector<16x1xf32> to vector<16x256xf32>
    %23 = arith.mulf %13, %22 : vector<16x256xf32>
    %c0_12 = arith.constant 0 : index
    %c0_13 = arith.constant 0 : index
    %24 = vector.load %arg5[%c0_12, %c0_13] : memref<1x256xf32, #tpu.memory_space<vmem>>, vector<1x256xf32>
    %25 = vector.broadcast %24 : vector<1x256xf32> to vector<16x256xf32>
    %26 = arith.mulf %23, %25 : vector<16x256xf32>
    %c0_14 = arith.constant 0 : index
    %c0_15 = arith.constant 0 : index
    %27 = vector.load %arg6[%c0_14, %c0_15] : memref<1x256xf32, #tpu.memory_space<vmem>>, vector<1x256xf32>
    %28 = vector.broadcast %27 : vector<1x256xf32> to vector<16x256xf32>
    %29 = arith.addf %26, %28 : vector<16x256xf32>
    %c0_16 = arith.constant 0 : index
    %c0_17 = arith.constant 0 : index
    %30 = vector.load %arg7[%c0_16, %c0_17] : memref<16x256xf32, #tpu.memory_space<vmem>>, vector<16x256xf32>
    tpu.vector_store %arg7[%c0_16, %c0_17], %29 {strides = array<i32>} : memref<16x256xf32, #tpu.memory_space<vmem>>, vector<16x256xf32>,
    return
  }
  func.func @transform_0(%arg0: i32) -> (i32, i32) {
    %c0_i32 = arith.constant 0 : i32
    %c0_i32_0 = arith.constant 0 : i32
    return %arg0, %c0_i32 : i32, i32
  }
  func.func @transform_1(%arg0: i32) -> (i32, i32) {
    %c0_i32 = arith.constant 0 : i32
    %c0_i32_0 = arith.constant 0 : i32
    %c0_i32_1 = arith.constant 0 : i32
    return %c0_i32, %c0_i32_0 : i32, i32
  }
  func.func @transform_2(%arg0: i32) -> (i32, i32) {
    %c0_i32 = arith.constant 0 : i32
    %c0_i32_0 = arith.constant 0 : i32
    %c0_i32_1 = arith.constant 0 : i32
    return %c0_i32, %c0_i32_0 : i32, i32
  }
  func.func @transform_3(%arg0: i32) -> (i32, i32) {
    %c0_i32 = arith.constant 0 : i32
    %c0_i32_0 = arith.constant 0 : i32
    return %arg0, %c0_i32 : i32, i32
  }
  func.func @transform_4(%arg0: i32) -> (i32, i32) {
    %c0_i32 = arith.constant 0 : i32
    %c0_i32_0 = arith.constant 0 : i32
    %c0_i32_1 = arith.constant 0 : i32
    return %c0_i32, %c0_i32_0 : i32, i32
  }
  func.func @transform_5(%arg0: i32) -> (i32, i32) {
    %c0_i32 = arith.constant 0 : i32
    %c0_i32_0 = arith.constant 0 : i32
    %c0_i32_1 = arith.constant 0 : i32
    return %c0_i32, %c0_i32_0 : i32, i32
  }
  func.func @transform_6(%arg0: i32) -> (i32, i32) {
    %c0_i32 = arith.constant 0 : i32
    %c0_i32_0 = arith.constant 0 : i32
    return %arg0, %c0_i32 : i32, i32
  }
}

module attributes {stable_mosaic.version = 11 : i64} {
  func.func @_linear_kernel(%arg0: i32, %arg1: i32, %arg2: memref<16x256xf32, #tpu.memory_space<vmem>>, %arg3: memref<256x256xbf16, #tpu.memory_space<vmem>>, %arg4: memref<16x256xbf16, #tpu.memory_space<vmem>>) attributes {dimension_semantics = [#tpu.dimension_semantics<parallel>, #tpu.dimension_semantics<parallel>], iteration_bounds = array<i64: 1, 1>, scalar_prefetch = 0 : i64, scratch_operands = 0 : i64, tpu.core_type = #tpu.core_type<tc>, window_params = [{transform_indices = @transform_0, window_bounds = array<i64: 16, 256>}, {transform_indices = @transform_1, window_bounds = array<i64: 256, 256>}, {transform_indices = @transform_2, window_bounds = array<i64: 16, 256>}]} {
    %c0 = arith.constant 0 : index
    %c0_0 = arith.constant 0 : index
    %0 = vector.load %arg2[%c0, %c0_0] : memref<16x256xf32, #tpu.memory_space<vmem>>, vector<16x256xf32>
    %1 = arith.truncf %0 : vector<16x256xf32> to vector<16x256xbf16>
    %c0_1 = arith.constant 0 : index
    %c0_2 = arith.constant 0 : index
    %2 = vector.load %arg3[%c0_1, %c0_2] : memref<256x256xbf16, #tpu.memory_space<vmem>>, vector<256x256xbf16>
    %cst = arith.constant dense<0.000000e+00> : vector<16x256xf32>
    %3 = tpu.matmul %1, %2, %cst {dimension_numbers = #tpu.dot_dimension_numbers<[1], [0], [0], [1], [0, 0, 1, 1], [], []>} : vector<16x256xbf16>, vector<256x256xbf16>, vector<16x256xf32> -> vector<16x256xf32>
    %4 = arith.truncf %3 : vector<16x256xf32> to vector<16x256xbf16>
    %c0_3 = arith.constant 0 : index
    %c0_4 = arith.constant 0 : index
    %5 = vector.load %arg4[%c0_3, %c0_4] : memref<16x256xbf16, #tpu.memory_space<vmem>>, vector<16x256xbf16>
    tpu.vector_store %arg4[%c0_3, %c0_4], %4 {strides = array<i32>} : memref<16x256xbf16, #tpu.memory_space<vmem>>, vector<16x256xbf16>,
    return
  }
  func.func @transform_0(%arg0: i32, %arg1: i32) -> (i32, i32) {
    %c0_i32 = arith.constant 0 : i32
    %c0_i32_0 = arith.constant 0 : i32
    return %arg0, %c0_i32 : i32, i32
  }
  func.func @transform_1(%arg0: i32, %arg1: i32) -> (i32, i32) {
    %c0_i32 = arith.constant 0 : i32
    %c0_i32_0 = arith.constant 0 : i32
    return %c0_i32, %arg1 : i32, i32
  }
  func.func @transform_2(%arg0: i32, %arg1: i32) -> (i32, i32) {
    %c0_i32 = arith.constant 0 : i32
    return %arg0, %arg1 : i32, i32
  }
}

module attributes {stable_mosaic.version = 11 : i64} {
  func.func @_linear_kernel(%arg0: i32, %arg1: i32, %arg2: memref<16x256xf32, #tpu.memory_space<vmem>>, %arg3: memref<256x256xbf16, #tpu.memory_space<vmem>>, %arg4: memref<1x256xf32, #tpu.memory_space<vmem>>, %arg5: memref<16x256xbf16, #tpu.memory_space<vmem>>) attributes {dimension_semantics = [#tpu.dimension_semantics<parallel>, #tpu.dimension_semantics<parallel>], iteration_bounds = array<i64: 1, 1>, scalar_prefetch = 0 : i64, scratch_operands = 0 : i64, tpu.core_type = #tpu.core_type<tc>, window_params = [{transform_indices = @transform_0, window_bounds = array<i64: 16, 256>}, {transform_indices = @transform_1, window_bounds = array<i64: 256, 256>}, {transform_indices = @transform_2, window_bounds = array<i64: 1, 256>}, {transform_indices = @transform_3, window_bounds = array<i64: 16, 256>}]} {
    %c0 = arith.constant 0 : index
    %c0_0 = arith.constant 0 : index
    %0 = vector.load %arg2[%c0, %c0_0] : memref<16x256xf32, #tpu.memory_space<vmem>>, vector<16x256xf32>
    %1 = arith.truncf %0 : vector<16x256xf32> to vector<16x256xbf16>
    %c0_1 = arith.constant 0 : index
    %c0_2 = arith.constant 0 : index
    %2 = vector.load %arg3[%c0_1, %c0_2] : memref<256x256xbf16, #tpu.memory_space<vmem>>, vector<256x256xbf16>
    %cst = arith.constant dense<0.000000e+00> : vector<16x256xf32>
    %3 = tpu.matmul %1, %2, %cst {dimension_numbers = #tpu.dot_dimension_numbers<[1], [0], [0], [1], [0, 0, 1, 1], [], []>} : vector<16x256xbf16>, vector<256x256xbf16>, vector<16x256xf32> -> vector<16x256xf32>
    %c0_3 = arith.constant 0 : index
    %c0_4 = arith.constant 0 : index
    %4 = vector.load %arg4[%c0_3, %c0_4] : memref<1x256xf32, #tpu.memory_space<vmem>>, vector<1x256xf32>
    %5 = vector.broadcast %4 : vector<1x256xf32> to vector<16x256xf32>
    %6 = arith.addf %3, %5 : vector<16x256xf32>
    %7 = arith.truncf %6 : vector<16x256xf32> to vector<16x256xbf16>
    %c0_5 = arith.constant 0 : index
    %c0_6 = arith.constant 0 : index
    %8 = vector.load %arg5[%c0_5, %c0_6] : memref<16x256xbf16, #tpu.memory_space<vmem>>, vector<16x256xbf16>
    tpu.vector_store %arg5[%c0_5, %c0_6], %7 {strides = array<i32>} : memref<16x256xbf16, #tpu.memory_space<vmem>>, vector<16x256xbf16>,
    return
  }
  func.func @transform_0(%arg0: i32, %arg1: i32) -> (i32, i32) {
    %c0_i32 = arith.constant 0 : i32
    %c0_i32_0 = arith.constant 0 : i32
    return %arg0, %c0_i32 : i32, i32
  }
  func.func @transform_1(%arg0: i32, %arg1: i32) -> (i32, i32) {
    %c0_i32 = arith.constant 0 : i32
    %c0_i32_0 = arith.constant 0 : i32
    return %c0_i32, %arg1 : i32, i32
  }
  func.func @transform_2(%arg0: i32, %arg1: i32) -> (i32, i32) {
    %c0_i32 = arith.constant 0 : i32
    %c0_i32_0 = arith.constant 0 : i32
    return %c0_i32, %arg1 : i32, i32
  }
  func.func @transform_3(%arg0: i32, %arg1: i32) -> (i32, i32) {
    %c0_i32 = arith.constant 0 : i32
    return %arg0, %arg1 : i32, i32
  }
}

module attributes {stable_mosaic.version = 11 : i64} {
  func.func @_linear_kernel(%arg0: i32, %arg1: i32, %arg2: memref<16x256xf32, #tpu.memory_space<vmem>>, %arg3: memref<256x512xbf16, #tpu.memory_space<vmem>>, %arg4: memref<1x512xf32, #tpu.memory_space<vmem>>, %arg5: memref<16x512xbf16, #tpu.memory_space<vmem>>) attributes {dimension_semantics = [#tpu.dimension_semantics<parallel>, #tpu.dimension_semantics<parallel>], iteration_bounds = array<i64: 1, 1>, scalar_prefetch = 0 : i64, scratch_operands = 0 : i64, tpu.core_type = #tpu.core_type<tc>, window_params = [{transform_indices = @transform_0, window_bounds = array<i64: 16, 256>}, {transform_indices = @transform_1, window_bounds = array<i64: 256, 512>}, {transform_indices = @transform_2, window_bounds = array<i64: 1, 512>}, {transform_indices = @transform_3, window_bounds = array<i64: 16, 512>}]} {
    %c0 = arith.constant 0 : index
    %c0_0 = arith.constant 0 : index
    %0 = vector.load %arg2[%c0, %c0_0] : memref<16x256xf32, #tpu.memory_space<vmem>>, vector<16x256xf32>
    %1 = arith.truncf %0 : vector<16x256xf32> to vector<16x256xbf16>
    %c0_1 = arith.constant 0 : index
    %c0_2 = arith.constant 0 : index
    %2 = vector.load %arg3[%c0_1, %c0_2] : memref<256x512xbf16, #tpu.memory_space<vmem>>, vector<256x512xbf16>
    %cst = arith.constant dense<0.000000e+00> : vector<16x512xf32>
    %3 = tpu.matmul %1, %2, %cst {dimension_numbers = #tpu.dot_dimension_numbers<[1], [0], [0], [1], [0, 0, 1, 1], [], []>} : vector<16x256xbf16>, vector<256x512xbf16>, vector<16x512xf32> -> vector<16x512xf32>
    %c0_3 = arith.constant 0 : index
    %c0_4 = arith.constant 0 : index
    %4 = vector.load %arg4[%c0_3, %c0_4] : memref<1x512xf32, #tpu.memory_space<vmem>>, vector<1x512xf32>
    %5 = vector.broadcast %4 : vector<1x512xf32> to vector<16x512xf32>
    %6 = arith.addf %3, %5 : vector<16x512xf32>
    %cst_5 = arith.constant 0.000000e+00 : f32
    %7 = vector.broadcast %cst_5 : f32 to vector<16x512xf32>
    %8 = arith.maximumf %6, %7 : vector<16x512xf32>
    %9 = arith.truncf %8 : vector<16x512xf32> to vector<16x512xbf16>
    %c0_6 = arith.constant 0 : index
    %c0_7 = arith.constant 0 : index
    %10 = vector.load %arg5[%c0_6, %c0_7] : memref<16x512xbf16, #tpu.memory_space<vmem>>, vector<16x512xbf16>
    tpu.vector_store %arg5[%c0_6, %c0_7], %9 {strides = array<i32>} : memref<16x512xbf16, #tpu.memory_space<vmem>>, vector<16x512xbf16>,
    return
  }
  func.func @transform_0(%arg0: i32, %arg1: i32) -> (i32, i32) {
    %c0_i32 = arith.constant 0 : i32
    %c0_i32_0 = arith.constant 0 : i32
    return %arg0, %c0_i32 : i32, i32
  }
  func.func @transform_1(%arg0: i32, %arg1: i32) -> (i32, i32) {
    %c0_i32 = arith.constant 0 : i32
    %c0_i32_0 = arith.constant 0 : i32
    return %c0_i32, %arg1 : i32, i32
  }
  func.func @transform_2(%arg0: i32, %arg1: i32) -> (i32, i32) {
    %c0_i32 = arith.constant 0 : i32
    %c0_i32_0 = arith.constant 0 : i32
    return %c0_i32, %arg1 : i32, i32
  }
  func.func @transform_3(%arg0: i32, %arg1: i32) -> (i32, i32) {
    %c0_i32 = arith.constant 0 : i32
    return %arg0, %arg1 : i32, i32
  }
}

module attributes {stable_mosaic.version = 11 : i64} {
  func.func @_joint_kernel(%arg0: i32, %arg1: i32, %arg2: i32, %arg3: memref<1x8x256xbf16, #tpu.memory_space<vmem>>, %arg4: memref<1x8x256xbf16, #tpu.memory_space<vmem>>, %arg5: memref<256x128xbf16, #tpu.memory_space<vmem>>, %arg6: memref<1x8x8x128xf32, #tpu.memory_space<vmem>>) attributes {dimension_semantics = [#tpu.dimension_semantics<parallel>, #tpu.dimension_semantics<parallel>, #tpu.dimension_semantics<parallel>], iteration_bounds = array<i64: 2, 1, 1>, scalar_prefetch = 0 : i64, scratch_operands = 0 : i64, tpu.core_type = #tpu.core_type<tc>, window_params = [{transform_indices = @transform_0, window_bounds = array<i64: 1, 8, 256>}, {transform_indices = @transform_1, window_bounds = array<i64: 1, 8, 256>}, {transform_indices = @transform_2, window_bounds = array<i64: 256, 128>}, {transform_indices = @transform_3, window_bounds = array<i64: 1, 8, 8, 128>}]} {
    %c0 = arith.constant 0 : index
    %c0_0 = arith.constant 0 : index
    %c0_1 = arith.constant 0 : index
    %0 = vector.load %arg3[%c0, %c0_0, %c0_1] : memref<1x8x256xbf16, #tpu.memory_space<vmem>>, vector<1x8x256xbf16>
    %1 = vector.shape_cast %0 : vector<1x8x256xbf16> to vector<8x256xbf16>
    %2 = arith.extf %1 : vector<8x256xbf16> to vector<8x256xf32>
    %c0_2 = arith.constant 0 : index
    %c0_3 = arith.constant 0 : index
    %c0_4 = arith.constant 0 : index
    %3 = vector.load %arg4[%c0_2, %c0_3, %c0_4] : memref<1x8x256xbf16, #tpu.memory_space<vmem>>, vector<1x8x256xbf16>
    %4 = vector.shape_cast %3 : vector<1x8x256xbf16> to vector<8x256xbf16>
    %5 = arith.extf %4 : vector<8x256xbf16> to vector<8x256xf32>
    %6 = vector.shape_cast %2 : vector<8x256xf32> to vector<8x1x256xf32>
    %7 = vector.shape_cast %5 : vector<8x256xf32> to vector<1x8x256xf32>
    %8 = vector.broadcast %6 : vector<8x1x256xf32> to vector<8x8x256xf32>
    %9 = vector.broadcast %7 : vector<1x8x256xf32> to vector<8x8x256xf32>
    %10 = arith.addf %8, %9 : vector<8x8x256xf32>
    %11 = math.tanh %10 : vector<8x8x256xf32>
    %12 = vector.shape_cast %11 : vector<8x8x256xf32> to vector<64x256xf32>
    %13 = arith.truncf %12 : vector<64x256xf32> to vector<64x256xbf16>
    %c0_5 = arith.constant 0 : index
    %c0_6 = arith.constant 0 : index
    %14 = vector.load %arg5[%c0_5, %c0_6] : memref<256x128xbf16, #tpu.memory_space<vmem>>, vector<256x128xbf16>
    %cst = arith.constant dense<0.000000e+00> : vector<64x128xf32>
    %15 = tpu.matmul %13, %14, %cst {dimension_numbers = #tpu.dot_dimension_numbers<[1], [0], [0], [1], [0, 0, 1, 1], [], []>} : vector<64x256xbf16>, vector<256x128xbf16>, vector<64x128xf32> -> vector<64x128xf32>
    %16 = vector.shape_cast %15 : vector<64x128xf32> to vector<8x8x128xf32>
    %c0_7 = arith.constant 0 : index
    %c0_8 = arith.constant 0 : index
    %c0_9 = arith.constant 0 : index
    %c0_10 = arith.constant 0 : index
    %17 = vector.load %arg6[%c0_7, %c0_8, %c0_9, %c0_10] : memref<1x8x8x128xf32, #tpu.memory_space<vmem>>, vector<1x8x8x128xf32>
    %18 = vector.shape_cast %17 : vector<1x8x8x128xf32> to vector<8x8x128xf32>
    %19 = vector.shape_cast %16 : vector<8x8x128xf32> to vector<1x8x8x128xf32>
    tpu.vector_store %arg6[%c0_7, %c0_8, %c0_9, %c0_10], %19 {strides = array<i32>} : memref<1x8x8x128xf32, #tpu.memory_space<vmem>>, vector<1x8x8x128xf32>,
    return
  }
  func.func @transform_0(%arg0: i32, %arg1: i32, %arg2: i32) -> (i32, i32, i32) {
    %c0_i32 = arith.constant 0 : i32
    %c0_i32_0 = arith.constant 0 : i32
    return %arg0, %arg1, %c0_i32 : i32, i32, i32
  }
  func.func @transform_1(%arg0: i32, %arg1: i32, %arg2: i32) -> (i32, i32, i32) {
    %c0_i32 = arith.constant 0 : i32
    %c0_i32_0 = arith.constant 0 : i32
    %c0_i32_1 = arith.constant 0 : i32
    return %arg0, %c0_i32, %c0_i32_0 : i32, i32, i32
  }
  func.func @transform_2(%arg0: i32, %arg1: i32, %arg2: i32) -> (i32, i32) {
    %c0_i32 = arith.constant 0 : i32
    %c0_i32_0 = arith.constant 0 : i32
    return %c0_i32, %arg2 : i32, i32
  }
  func.func @transform_3(%arg0: i32, %arg1: i32, %arg2: i32) -> (i32, i32, i32, i32) {
    %c0_i32 = arith.constant 0 : i32
    %c0_i32_0 = arith.constant 0 : i32
    return %arg0, %arg1, %c0_i32, %arg2 : i32, i32, i32, i32
  }
}

</mosaic_0001>

<bundles_post_ra>
// kernel: transformer_decoder_forward.14
= control target key start
LH: loop header
LB: loop body
LE: loop exit
PB: predicated region body
PF: predicated region fallthrough
CT: control target
= control target key end

     0   :  { %s651_s12 = smov 0   ;;  %s653_s13 = smov 0   ;;  %s728_s0 = inlined_call_operand.vmem [shape: bf16[2,8,768], index: 0, kind: input, shape index: {}, may-alias: {0,1,2}]   ;;  %s729_s1 = inlined_call_operand.vmem [shape: bf16[2,8,768], index: 1, kind: input, shape index: {}, may-alias: {0,1,2}]   ;;  %s730_s2 = inlined_call_operand.vmem [shape: bf16[2,8,768], index: 2, kind: input, shape index: {}, may-alias: {0,1,2}]   ;;  %s731_s3 = inlined_call_operand.vmem [shape: bf16[2,8,256], index: 3, kind: output, shape index: {}]  }
   0x1   :  { %s655_s14 = smov 0   ;;  %s657_s15 = smov 0  }
   0x2   :  { %s659_s16 = smov 0  }
   0x3 LB: > { %s22_s17 = sadd.s32 1, %s619_s14  ;;  %s25_s18 = sadd.s32 1, %s623_s15  ;;  %s627_s16 = sphi %s659_s16, %s13_s16   ;;  %s623_s15 = sphi %s657_s15, %s735_s15   ;;  %s619_s14 = sphi %s655_s14, %s734_s14   ;;  %s615_s13 = sphi %s653_s13, %s733_s13   ;;  %s611_s12 = sphi %s651_s12, %s732_s12  }
   0x4   : > { %p23_p0 = scmp.ge.s32.totalorder %s22_s17, 2  ;;  %p517_p1 = scmp.ge.s32.totalorder %s627_s16, 1 }
   0x5   : > { %p194_p2 = scmp.lt.s32.totalorder %s627_s16, 5 }
   0x6   : > { %s737_s17 = smov (%p23_p0, %s22_s17), 0  ;;  %s739_s18 = smov (!%p23_p0, %s25_s18), %s623_s15 }
   0x7   : > { %p195_p3 = pnand %p517_p1, %p194_p2  ;;  %p27_p4 = scmp.ge.s32.totalorder %s739_s18, 2 }
   0x8   : > { %p242_p5 = scmp.lt.s32.totalorder (!%p195_p3), %s615_s13, 1  ;;  %s250_s19 = sadd.s32 (!%p195_p3), 2, %s611_s12 }
   0x9   : > { %s741_s18 = smov (%p27_p4, %s739_s18), 0  ;;  %198 = sbr.rel (%p195_p3) target bundleno = 737 (0x2e1), region = 32 }
   0xa   : > { %p253_p6 = scmp.lt.s32.totalorder (!%p195_p3), %s250_s19, 5  ;;  %p244_p7 = scmp.lt.s32.totalorder (!%p195_p3), %s611_s12, 5 }
   0xb   : > { %s260_s5 = sadd.s32 (!%p195_p3), 4, %s611_s12  ;;  %p272_p9 = scmp.lt.s32.totalorder (!%p195_p3), %s611_s12, 1 }
   0xc   : > { %p263_p8 = scmp.lt.s32.totalorder (!%p195_p3), %s260_s5, 5 }
   0xe   : > { %v629_v0 = vmov 0.0   ;;  %vm630_vm0 = vmmov 0   ;;  %s743_s13 = smov (!%p242_p5, %s615_s13), 1  ;;  %s745_s19 = smov (!%p253_p6, %s250_s19), 5  ;;  %v323_v3 = vlaneseq  ;;  %vm329_vm2 = vcmask 64512  }
   0xf   : > { %530 = vmatprep.subr.bf16.mxu0 %v629_v0  ;;  %532 = vmatprep.mubr.msk.bf16.mxu0 %vm630_vm0, %v629_v0  ;;  %s688_s20 = smul.u32 6, %s743_s13  ;;  %s747_s5 = smov (!%p263_p8, %s260_s5), 5  ;;  %vm345_vm3 = vcmask 1043456  }
  0x10   : > { %536 = vmatprep.subr.bf16.mxu1 %v629_v0  ;;  %538 = vmatprep.mubr.msk.bf16.mxu1 %vm630_vm0, %v629_v0  ;;  %s245_s21 = scalar_select %p244_p7, %s611_s12, 5  ;;  %v324_v4 = vshrl.u32 %v323_v3, 7  ;;  %v326_v5 = vand.u32 127, %v323_v3 }
  0x11   : > { %s256_s22 = sadd.s32 %s688_s20, %s745_s19  ;;  %s266_s6 = sadd.s32 %s688_s20, %s747_s5 }
  0x12   : > { %s519_s23 = sshll.u32 %s256_s22, 2  ;;  %s247_s24 = sadd.s32 %s688_s20, %s245_s21  ;;  %vm327_vm1 = vcmp.le.s32.totalorder %v326_v5, %v324_v4 }
  0x13   : > { %s258_s27 = scalar_lea.vmem %s729_s1, %s519_s23  ;;  %s518_s28 = sshll.u32 %s247_s24, 2 }
  0x14   : > { %v280_v1 = vld [vmem:[%s258_s27] sm:$0xf]  ;;  %s249_s4 = scalar_lea.vmem %s728_s0, %s518_s28  ;;  %s520_s7 = sshll.u32 %s266_s6, 2 }
  0x15   : > { %531 = vmatpush3.bf16.xpose.msra.mxu0 %v280_v1  ;;  %v279_v2 = vld [vmem:[%s249_s4] sm:$0xf]  ;;  %s268_s10 = scalar_lea.vmem %s730_s2, %s520_s7  ;;  %s749_s12 = smov (!%p272_p9, %s611_s12), 1 }
  0x16   : > { %v281_v18 = vld [vmem:[%s268_s10] sm:$0xf]  ;;  %s521_s11 = sshll.u32 %s743_s13, 1 }
  0x17   : > { %v347_v19 = vsel %vm345_vm3, %v281_v18, 0  ;;  %s275_s19 = sadd.s32 %s521_s11, %s749_s12 }
  0x18   : > { %537 = vmatpush3.bf16.msra.mxu1 %v347_v19  ;;  %s522_s20 = sshll.u32 %s275_s19, 2 }
  0x19   : > { %s277_s23 = scalar_lea.vmem %s731_s3, %s522_s20 }
  0x1c   : > { %533 = vmatmul.mubr.bf16.vlgmr.msra.gmra.mxu0 %v279_v2 }
  0xdc   : > { %v316_v6 = vpop.f32.mrf.mxu0 }
  0xdd   : > { %v322_v7 = vmul.f32 0.088388346, %v316_v6 }
  0xde   : > { %v534_v8 = vpop.f32.mrf.mxu0 }
  0xdf   : > { %v328_v9 = vsel %vm327_vm1, %v322_v7, -1e+30 }
  0xe0   : > { %v319_v10 = vpop.f32.mrf.mxu0  ;;  %v330_v11 = vsel %vm329_vm2, %v328_v9, -inf }
  0xe1   : > { %331 = vmax.xlane.f32.xlu0 %v330_v11 }
  0xe2   : > { %v535_v12 = vpop.f32.mrf.mxu0 }
 0x16a   : > { %v332_v13 = vpop.xlane.xlu0 %331 }
 0x16b   : > { %v333_v14 = vsub.f32 %v328_v9, %v332_v13 }
 0x16d   : > { %v334_v15 = vmul.f32 1.442695, %v333_v14 }
 0x16f   : > { %585 = vpow2.f32 %v334_v15 }
 0x17c   : > { %v586_v16 = vpop.eup %585 }
 0x17d   : > { %v336_v17 = vsel %vm329_vm2, %v586_v16, 0.0 }
 0x17e   : > { %337 = vadd.xlane.f32.xlu0 %v336_v17 }
 0x207   : > { %v338_v20 = vpop.xlane.xlu0 %337 }
 0x208   : > { %587 = vrcp.f32 %v338_v20 }
 0x215   : > { %v588_v21 = vpop.eup %587 }
 0x216   : > { %v340_v22 = vmul.f32 %v588_v21, %v586_v16 }
 0x218   : > { %v341_v23 = vpack.c.bf16 %v340_v22, %v340_v22 }
 0x21a   : > { %539 = vmatmul.mubr.msk.bf16.vlgmr.msra.gmra.mxu1 %vm329_vm2, %v341_v23 }
 0x2da   : > { %v383_v24 = vpop.f32.mrf.mxu1 }
 0x2db   : > { %v389_v25 = vpack.c.bf16 %v383_v24, %v383_v24 }
 0x2dc   : > { %v540_v26 = vpop.f32.mrf.mxu1 }
 0x2dd   : > { %390 = vst [vmem:[%s277_s23] sm:$0xf] %v389_v25 }
 0x2de   : > { %v386_v27 = vpop.f32.mrf.mxu1 }
 0x2e0   : > { %v541_v28 = vpop.f32.mrf.mxu1 }
 0x2e1 PF: > { %s13_s16 = sadd.s32 1, %s627_s16   ;;  %s732_s12 = smov %s619_s14 }
 0x2e2   : > { %p10_p10 = scmp.ge.s32.totalorder %s13_s16, 6   ;;  %s733_s13 = smov %s623_s15 }
 0x2e3   : > { %s734_s14 = smov %s737_s17  ;;  %s735_s15 = smov %s741_s18 }
 0x2e4   :  { %12 = sbr.rel (!%p10_p10) target bundleno = 3 (0x3), region = 68 }

// kernel: transformer_decoder_forward.15
= control target key start
LH: loop header
LB: loop body
LE: loop exit
PB: predicated region body
PF: predicated region fallthrough
CT: control target
= control target key end

     0   :  { %v280_v34 = vlaneseq  ;;  %s626_s1 = inlined_call_operand.vmem [shape: bf16[256,256], index: 1, kind: input, shape index: {}]   ;;  %s627_s0 = inlined_call_operand.vmem [shape: bf16[16,256], index: 0, kind: input, shape index: {}]   ;;  %s628_s3 = inlined_call_operand.vmem [shape: f32[16,256], index: 3, kind: input, shape index: {}]   ;;  %s629_s2 = inlined_call_operand.vmem [shape: f32[1,256], index: 2, kind: input, shape index: {}]   ;;  %s630_s4 = inlined_call_operand.vmem [shape: f32[1,256], index: 4, kind: input, shape index: {}]   ;;  %s631_s5 = inlined_call_operand.vmem [shape: f32[1,256], index: 5, kind: input, shape index: {}]   ;;  %s632_s6 = inlined_call_operand.vmem [shape: f32[16,256], index: 6, kind: output, shape index: {}]  }
   0x1   :  { %v401_v0 = vld [vmem:[%s626_s1 + $0x74] ss:$8 sps:$4 sm:$0xff]   ;;  %v403_v1 = vld [vmem:[%s626_s1 + $0x70] ss:$8 sps:$4 sm:$0xff]   ;;  %v404_v2 = vld [vmem:[%s626_s1 + $0x64] ss:$8 sps:$4 sm:$0xff]  }
   0x2   :  { %227 = vmatprep.subr.bf16.mxu0 %v401_v0  ;;  %v406_v3 = vld [vmem:[%s626_s1 + $0x60] ss:$8 sps:$4 sm:$0xff]   ;;  %v407_v4 = vld [vmem:[%s626_s1 + $0x54] ss:$8 sps:$4 sm:$0xff]   ;;  %v409_v5 = vld [vmem:[%s626_s1 + $0x50] ss:$8 sps:$4 sm:$0xff]  }
   0x3   :  { %228 = vmatpush1.bf16.msra.mxu0 %v403_v1  ;;  %v410_v6 = vld [vmem:[%s626_s1 + $0x44] ss:$8 sps:$4 sm:$0xff]   ;;  %v412_v7 = vld [vmem:[%s626_s1 + $0x40] ss:$8 sps:$4 sm:$0xff]   ;;  %v413_v8 = vld [vmem:[%s626_s1 + $0x34] ss:$8 sps:$4 sm:$0xff]  }
   0x4   :  { %229 = vmatprep.subr.bf16.mxu0 %v404_v2  ;;  %v415_v9 = vld [vmem:[%s626_s1 + $0x30] ss:$8 sps:$4 sm:$0xff]   ;;  %v416_v10 = vld [vmem:[%s626_s1 + $0x24] ss:$8 sps:$4 sm:$0xff]   ;;  %v418_v11 = vld [vmem:[%s626_s1 + $0x20] ss:$8 sps:$4 sm:$0xff]  }
   0x5   :  { %v419_v12 = vld [vmem:[%s626_s1 + $0x14] ss:$8 sps:$4 sm:$0xff]   ;;  %v451_v13 = vld [vmem:[%s627_s0 + $0x4] ss:$8 sps:$4 sm:$0xff]   ;;  %v421_v14 = vld [vmem:[%s626_s1 + $0x10] ss:$8 sps:$4 sm:$0xff]  }
   0x6   :  { %v422_v15 = vld [vmem:[%s626_s1 + $0x4] ss:$8 sps:$4 sm:$0xff]   ;;  %259 = vmatprep.mubr.bf16.mxu0 %v451_v13  ;;  %v424_v16 = vld [vmem:[%s626_s1] ss:$8 sps:$4 sm:$0xff]   ;;  %v425_v17 = vld [vmem:[%s626_s1 + $0xf4] ss:$8 sps:$4 sm:$0xff]  }
   0x7   :  { %230 = vmatpush1.bf16.msra.mxu0 %v406_v3  ;;  %v427_v18 = vld [vmem:[%s626_s1 + $0xf0] ss:$8 sps:$4 sm:$0xff]   ;;  %v428_v19 = vld [vmem:[%s626_s1 + $0xe4] ss:$8 sps:$4 sm:$0xff]   ;;  %v430_v20 = vld [vmem:[%s626_s1 + $0xe0] ss:$8 sps:$4 sm:$0xff]  }
   0x8   :  { %231 = vmatprep.subr.bf16.mxu0 %v407_v4  ;;  %v431_v21 = vld [vmem:[%s626_s1 + $0xd4] ss:$8 sps:$4 sm:$0xff]   ;;  %v433_v22 = vld [vmem:[%s626_s1 + $0xd0] ss:$8 sps:$4 sm:$0xff]   ;;  %v434_v23 = vld [vmem:[%s626_s1 + $0xc4] ss:$8 sps:$4 sm:$0xff]  }
   0x9   :  { %v436_v24 = vld [vmem:[%s626_s1 + $0xc0] ss:$8 sps:$4 sm:$0xff]   ;;  %v437_v25 = vld [vmem:[%s626_s1 + $0xb4] ss:$8 sps:$4 sm:$0xff]   ;;  %v439_v26 = vld [vmem:[%s626_s1 + $0xb0] ss:$8 sps:$4 sm:$0xff]  }
   0xa   :  { %v440_v27 = vld [vmem:[%s626_s1 + $0xa4] ss:$8 sps:$4 sm:$0xff]   ;;  %v442_v28 = vld [vmem:[%s626_s1 + $0xa0] ss:$8 sps:$4 sm:$0xff]   ;;  %v443_v29 = vld [vmem:[%s626_s1 + $0x94] ss:$8 sps:$4 sm:$0xff]  }
   0xb   :  { %232 = vmatpush1.bf16.msra.mxu0 %v409_v5  ;;  %v445_v30 = vld [vmem:[%s626_s1 + $0x90] ss:$8 sps:$4 sm:$0xff]   ;;  %v446_v31 = vld [vmem:[%s626_s1 + $0x84] ss:$8 sps:$4 sm:$0xff]   ;;  %v448_v32 = vld [vmem:[%s626_s1 + $0x80] ss:$8 sps:$4 sm:$0xff]  }
   0xc   :  { %233 = vmatprep.subr.bf16.mxu0 %v410_v6  ;;  %v449_v33 = vld [vmem:[%s627_s0] ss:$8 sps:$4 sm:$0xff]   ;;  %v281_v35 = vshrl.u32 %v280_v34, 7  ;;  %v272_v46 = vld [vmem:[%s628_s3 + $0x10] sm:$0xff]  ;;  %v273_v49 = vld [vmem:[%s628_s3 + $0x18] sm:$0xff] }
   0xd   :  { %v270_v38 = vld [vmem:[%s628_s3] sm:$0xff]  ;;  %v271_v41 = vld [vmem:[%s628_s3 + $0x8] sm:$0xff] }
   0xe   :  { %v282_v36 = vsub.s32 0, %v281_v35  ;;  %v286_v37 = vsub.s32 1, %v281_v35  ;;  %v278_v39 = vld [vmem:[%s629_s2] sm:$0x3] }
   0xf   :  { %234 = vmatpush1.bf16.msra.mxu0 %v412_v7 }
  0x10   :  { %235 = vmatprep.subr.bf16.mxu0 %v413_v8  ;;  %v283_v43 = vrot.slane %v278_v39, %v282_v36  ;;  %v287_v44 = vrot.slane %v278_v39, %v286_v37 }
  0x13   :  { %236 = vmatpush1.bf16.msra.mxu0 %v415_v9 }
  0x14   :  { %237 = vmatprep.subr.bf16.mxu0 %v416_v10 }
  0x17   :  { %238 = vmatpush1.bf16.msra.mxu0 %v418_v11 }
  0x18   :  { %239 = vmatprep.subr.bf16.mxu0 %v419_v12 }
  0x1b   :  { %240 = vmatpush1.bf16.msra.mxu0 %v421_v14 }
  0x1c   :  { %241 = vmatprep.subr.bf16.mxu0 %v422_v15  ;;  %v327_v15 = vld [vmem:[%s630_s4] sm:$0x3] }
  0x1f   :  { %242 = vmatpush1.bf16.msra.mxu0 %v424_v16  ;;  %v343_v16 = vld [vmem:[%s631_s5] sm:$0x3] }
  0x20   :  { %243 = vmatprep.subr.bf16.mxu0 %v425_v17  ;;  %v332_v17 = vrot.slane %v327_v15, %v282_v36 }
  0x23   :  { %244 = vmatpush2.bf16.msra.mxu0 %v427_v18  ;;  %v336_v18 = vrot.slane %v327_v15, %v286_v37 }
  0x24   :  { %245 = vmatprep.subr.bf16.mxu0 %v428_v19 }
  0x27   :  { %246 = vmatpush2.bf16.msra.mxu0 %v430_v20  ;;  %v348_v20 = vrot.slane %v343_v16, %v282_v36 }
  0x28   :  { %247 = vmatprep.subr.bf16.mxu0 %v431_v21  ;;  %v352_v21 = vrot.slane %v343_v16, %v286_v37 }
  0x2b   :  { %248 = vmatpush2.bf16.msra.mxu0 %v433_v22 }
  0x2c   :  { %249 = vmatprep.subr.bf16.mxu0 %v434_v23 }
  0x2f   :  { %250 = vmatpush2.bf16.msra.mxu0 %v436_v24 }
  0x30   :  { %251 = vmatprep.subr.bf16.mxu0 %v437_v25 }
  0x33   :  { %252 = vmatpush2.bf16.msra.mxu0 %v439_v26 }
  0x34   :  { %253 = vmatprep.subr.bf16.mxu0 %v440_v27 }
  0x37   :  { %254 = vmatpush2.bf16.msra.mxu0 %v442_v28 }
  0x38   :  { %255 = vmatprep.subr.bf16.mxu0 %v443_v29 }
  0x3b   :  { %256 = vmatpush2.bf16.msra.mxu0 %v445_v30 }
  0x3c   :  { %257 = vmatprep.subr.bf16.mxu0 %v446_v31 }
  0x3f   :  { %258 = vmatpush2.bf16.msra.mxu0 %v448_v32 }
  0x42   :  { %260 = vmatmul.mubr.bf16.vlgmr.msra.gmra.mxu0 %v449_v33 }
 0x102   :  { %v261_v40 = vpop.f32.mrf.mxu0 }
 0x103   :  { %v274_v42 = vadd.f32 %v270_v38, %v261_v40 }
 0x104   :  { %v263_v45 = vpop.f32.mrf.mxu0 }
 0x105   :  { %v275_v47 = vadd.f32 %v271_v41, %v263_v45  ;;  %v290_v51 = vadd.f32 %v283_v43, %v274_v42 }
 0x106   :  { %v265_v48 = vpop.f32.mrf.mxu0 }
 0x107   :  { %v276_v50 = vadd.f32 %v272_v46, %v265_v48  ;;  %v291_v52 = vadd.f32 %v287_v44, %v275_v47 }
 0x108   :  { %v267_v53 = vpop.f32.mrf.mxu0 }
 0x109   :  { %v277_v54 = vadd.f32 %v273_v49, %v267_v53  ;;  %v294_v55 = vadd.f32 %v291_v52, %v290_v51  ;;  %v292_v56 = vadd.f32 %v283_v43, %v276_v50 }
 0x10b   :  { %v293_v57 = vadd.f32 %v287_v44, %v277_v54  ;;  %295 = vadd.xlane.f32.xlu0 %v294_v55 }
 0x10d   :  { %v297_v58 = vadd.f32 %v293_v57, %v292_v56 }
 0x10f   :  { %298 = vadd.xlane.f32.xlu0 %v297_v58 }
 0x194   :  { %v296_v59 = vpop.xlane.xlu0 %295 }
 0x195   :  { %v301_v60 = vmul.f32 0.00390625, %v296_v59 }
 0x197   :  { %v303_v61 = vsub.f32 %v290_v51, %v301_v60  ;;  %v304_v62 = vsub.f32 %v291_v52, %v301_v60 }
 0x198   :  { %v299_v63 = vpop.xlane.xlu0 %298 }
 0x199   :  { %v302_v0 = vmul.f32 0.00390625, %v299_v63  ;;  %v307_v1 = vmul.f32 %v303_v61, %v303_v61  ;;  %v308_v2 = vmul.f32 %v304_v62, %v304_v62 }
 0x19b   :  { %v305_v3 = vsub.f32 %v292_v56, %v302_v0  ;;  %v306_v4 = vsub.f32 %v293_v57, %v302_v0  ;;  %v311_v5 = vadd.f32 %v308_v2, %v307_v1 }
 0x19d   :  { %312 = vadd.xlane.f32.xlu1 %v311_v5  ;;  %v309_v6 = vmul.f32 %v305_v3, %v305_v3  ;;  %v310_v7 = vmul.f32 %v306_v4, %v306_v4 }
 0x19f   :  { %v314_v8 = vadd.f32 %v310_v7, %v309_v6 }
 0x1a1   :  { %315 = vadd.xlane.f32.xlu1 %v314_v8 }
 0x226   :  { %v313_v9 = vpop.xlane.xlu1 %312 }
 0x227   :  { %v317_v10 = vmul.f32 0.00390625, %v313_v9 }
 0x229   :  { %v319_v11 = vadd.f32 1e-05, %v317_v10 }
 0x22a   :  { %v316_v12 = vpop.xlane.xlu1 %315 }
 0x22b   :  { %452 = vrsqrt.f32 %v319_v11  ;;  %v318_v13 = vmul.f32 0.00390625, %v316_v12 }
 0x22d   :  { %v320_v14 = vadd.f32 1e-05, %v318_v13 }
 0x22f   :  { %454 = vrsqrt.f32 %v320_v14 }
 0x238   :  { %v453_v19 = vpop.eup %452 }
 0x239   :  { %v323_v22 = vmul.f32 %v453_v19, %v303_v61  ;;  %v324_v23 = vmul.f32 %v453_v19, %v304_v62 }
 0x23b   :  { %v339_v24 = vmul.f32 %v332_v17, %v323_v22  ;;  %v340_v25 = vmul.f32 %v336_v18, %v324_v23 }
 0x23c   :  { %v455_v26 = vpop.eup %454 }
 0x23d   :  { %v355_v27 = vadd.f32 %v348_v20, %v339_v24  ;;  %v356_v28 = vadd.f32 %v352_v21, %v340_v25  ;;  %v325_v29 = vmul.f32 %v455_v26, %v305_v3  ;;  %v326_v30 = vmul.f32 %v455_v26, %v306_v4 }
 0x23f   :  { %359 = vst [vmem:[%s632_s6] sm:$0xff] %v355_v27  ;;  %360 = vst [vmem:[%s632_s6 + $0x8] sm:$0xff] %v356_v28  ;;  %v341_v31 = vmul.f32 %v332_v17, %v325_v29  ;;  %v342_v32 = vmul.f32 %v336_v18, %v326_v30 }
 0x241   :  { %v357_v33 = vadd.f32 %v348_v20, %v341_v31  ;;  %v358_v34 = vadd.f32 %v352_v21, %v342_v32 }
 0x243   :  { %361 = vst [vmem:[%s632_s6 + $0x10] sm:$0xff] %v357_v33  ;;  %362 = vst [vmem:[%s632_s6 + $0x18] sm:$0xff] %v358_v34 }

// kernel: transformer_decoder_forward.13
= control target key start
LH: loop header
LB: loop body
LE: loop exit
PB: predicated region body
PF: predicated region fallthrough
CT: control target
= control target key end

     0   :  { %s1406_s1 = inlined_call_operand.vmem [shape: bf16[256,768], index: 1, kind: input, shape index: {}]   ;;  %s1407_s0 = inlined_call_operand.vmem [shape: f32[16,256], index: 0, kind: input, shape index: {}]   ;;  %s1408_s2 = inlined_call_operand.vmem [shape: f32[1,768], index: 2, kind: input, shape index: {}]   ;;  %s1409_s3 = inlined_call_operand.vmem [shape: bf16[16,768], index: 3, kind: output, shape index: {}]  }
   0x1   :  { %v911_v0 = vld [vmem:[%s1406_s1 + $0x154] ss:$24 sps:$4 sm:$0xff]   ;;  %v913_v1 = vld [vmem:[%s1406_s1 + $0x150] ss:$24 sps:$4 sm:$0xff]   ;;  %v914_v2 = vld [vmem:[%s1406_s1 + $0x124] ss:$24 sps:$4 sm:$0xff]  }
   0x2   :  { %628 = vmatprep.subr.bf16.mxu0 %v911_v0  ;;  %v916_v3 = vld [vmem:[%s1406_s1 + $0x120] ss:$24 sps:$4 sm:$0xff]   ;;  %v917_v4 = vld [vmem:[%s1406_s1 + $0xf4] ss:$24 sps:$4 sm:$0xff]   ;;  %v919_v5 = vld [vmem:[%s1406_s1 + $0xf0] ss:$24 sps:$4 sm:$0xff]  }
   0x3   :  { %629 = vmatpush1.bf16.msra.mxu0 %v913_v1  ;;  %v920_v6 = vld [vmem:[%s1406_s1 + $0xc4] ss:$24 sps:$4 sm:$0xff]   ;;  %v922_v7 = vld [vmem:[%s1406_s1 + $0xc0] ss:$24 sps:$4 sm:$0xff]   ;;  %v923_v8 = vld [vmem:[%s1406_s1 + $0x94] ss:$24 sps:$4 sm:$0xff]  }
   0x4   :  { %630 = vmatprep.subr.bf16.mxu0 %v914_v2  ;;  %v925_v9 = vld [vmem:[%s1406_s1 + $0x90] ss:$24 sps:$4 sm:$0xff]   ;;  %v926_v10 = vld [vmem:[%s1406_s1 + $0x64] ss:$24 sps:$4 sm:$0xff]   ;;  %v928_v11 = vld [vmem:[%s1406_s1 + $0x60] ss:$24 sps:$4 sm:$0xff]  }
   0x5   :  { %v929_v12 = vld [vmem:[%s1406_s1 + $0x34] ss:$24 sps:$4 sm:$0xff]   ;;  %v958_v14 = vld [vmem:[%s1406_s1 + $0x158] ss:$24 sps:$4 sm:$0xff]   ;;  %v932_v18 = vld [vmem:[%s1406_s1 + $0x4] ss:$24 sps:$4 sm:$0xff]  }
   0x6   :  { %v956_v13 = vld [vmem:[%s1406_s1 + $0x15c] ss:$24 sps:$4 sm:$0xff]   ;;  %v931_v15 = vld [vmem:[%s1406_s1 + $0x30] ss:$24 sps:$4 sm:$0xff]   ;;  %v962_v16 = vld [vmem:[%s1406_s1 + $0x12c] ss:$24 sps:$4 sm:$0xff]  }
   0x7   :  { %631 = vmatpush1.bf16.msra.mxu0 %v916_v3  ;;  %671 = vmatprep.subr.bf16.mxu1 %v956_v13  ;;  %v15_v17 = vld [vmem:[%s1407_s0 + $0x8] sm:$0xff]  ;;  %v17_v19 = vld [vmem:[%s1407_s0 + $0x18] sm:$0xff]  ;;  %v14_v56 = vld [vmem:[%s1407_s0] sm:$0xff] }
   0x8   :  { %632 = vmatprep.subr.bf16.mxu0 %v917_v4  ;;  %672 = vmatpush1.bf16.msra.mxu1 %v958_v14  ;;  %v964_v20 = vld [vmem:[%s1406_s1 + $0x128] ss:$24 sps:$4 sm:$0xff]   ;;  %v1138_v21 = vpack.c.bf16 %v17_v19, %v15_v17  ;;  %v935_v23 = vld [vmem:[%s1406_s1 + $0x2d4] ss:$24 sps:$4 sm:$0xff]   ;;  %v970_v25 = vld [vmem:[%s1406_s1 + $0xf8] ss:$24 sps:$4 sm:$0xff]  }
   0x9   :  { %673 = vmatprep.subr.bf16.mxu1 %v962_v16  ;;  %v934_v22 = vld [vmem:[%s1406_s1] ss:$24 sps:$4 sm:$0xff]   ;;  %v968_v24 = vld [vmem:[%s1406_s1 + $0xfc] ss:$24 sps:$4 sm:$0xff]   ;;  %v974_v26 = vld [vmem:[%s1406_s1 + $0xcc] ss:$24 sps:$4 sm:$0xff]  }
   0xa   :  { %660 = vmatprep.mubr.bf16.mxu0 %v1138_v21  ;;  %703 = vmatprep.mubr.bf16.mxu1 %v1138_v21  ;;  %v937_v27 = vld [vmem:[%s1406_s1 + $0x2d0] ss:$24 sps:$4 sm:$0xff]   ;;  %v938_v28 = vld [vmem:[%s1406_s1 + $0x2a4] ss:$24 sps:$4 sm:$0xff]   ;;  %v940_v31 = vld [vmem:[%s1406_s1 + $0x2a0] ss:$24 sps:$4 sm:$0xff]  }
   0xb   :  { %633 = vmatpush1.bf16.msra.mxu0 %v919_v5  ;;  %v976_v29 = vld [vmem:[%s1406_s1 + $0xc8] ss:$24 sps:$4 sm:$0xff]   ;;  %v980_v30 = vld [vmem:[%s1406_s1 + $0x9c] ss:$24 sps:$4 sm:$0xff]   ;;  %v982_v33 = vld [vmem:[%s1406_s1 + $0x98] ss:$24 sps:$4 sm:$0xff]  }
   0xc   :  { %634 = vmatprep.subr.bf16.mxu0 %v920_v6  ;;  %674 = vmatpush1.bf16.msra.mxu1 %v964_v20  ;;  %v941_v32 = vld [vmem:[%s1406_s1 + $0x274] ss:$24 sps:$4 sm:$0xff]   ;;  %v943_v35 = vld [vmem:[%s1406_s1 + $0x270] ss:$24 sps:$4 sm:$0xff]   ;;  %v944_v36 = vld [vmem:[%s1406_s1 + $0x244] ss:$24 sps:$4 sm:$0xff]  }
   0xd   :  { %675 = vmatprep.subr.bf16.mxu1 %v968_v24  ;;  %v986_v34 = vld [vmem:[%s1406_s1 + $0x6c] ss:$24 sps:$4 sm:$0xff]   ;;  %v988_v37 = vld [vmem:[%s1406_s1 + $0x68] ss:$24 sps:$4 sm:$0xff]   ;;  %v992_v38 = vld [vmem:[%s1406_s1 + $0x3c] ss:$24 sps:$4 sm:$0xff]  }
   0xe   :  { %v946_v39 = vld [vmem:[%s1406_s1 + $0x240] ss:$24 sps:$4 sm:$0xff]   ;;  %v947_v40 = vld [vmem:[%s1406_s1 + $0x214] ss:$24 sps:$4 sm:$0xff]   ;;  %v949_v43 = vld [vmem:[%s1406_s1 + $0x210] ss:$24 sps:$4 sm:$0xff]  }
   0xf   :  { %635 = vmatpush1.bf16.msra.mxu0 %v922_v7  ;;  %v994_v41 = vld [vmem:[%s1406_s1 + $0x38] ss:$24 sps:$4 sm:$0xff]   ;;  %v998_v42 = vld [vmem:[%s1406_s1 + $0xc] ss:$24 sps:$4 sm:$0xff]   ;;  %v1000_v45 = vld [vmem:[%s1406_s1 + $0x8] ss:$24 sps:$4 sm:$0xff]  }
  0x10   :  { %636 = vmatprep.subr.bf16.mxu0 %v923_v8  ;;  %676 = vmatpush1.bf16.msra.mxu1 %v970_v25  ;;  %v950_v44 = vld [vmem:[%s1406_s1 + $0x1e4] ss:$24 sps:$4 sm:$0xff]   ;;  %v952_v47 = vld [vmem:[%s1406_s1 + $0x1e0] ss:$24 sps:$4 sm:$0xff]   ;;  %v953_v48 = vld [vmem:[%s1406_s1 + $0x1b4] ss:$24 sps:$4 sm:$0xff]  }
  0x11   :  { %677 = vmatprep.subr.bf16.mxu1 %v974_v26  ;;  %v1004_v46 = vld [vmem:[%s1406_s1 + $0x2dc] ss:$24 sps:$4 sm:$0xff]   ;;  %v1006_v49 = vld [vmem:[%s1406_s1 + $0x2d8] ss:$24 sps:$4 sm:$0xff]   ;;  %v1010_v50 = vld [vmem:[%s1406_s1 + $0x2ac] ss:$24 sps:$4 sm:$0xff]  }
  0x12   :  { %v955_v51 = vld [vmem:[%s1406_s1 + $0x1b0] ss:$24 sps:$4 sm:$0xff]   ;;  %v959_v52 = vld [vmem:[%s1406_s1 + $0x184] ss:$24 sps:$4 sm:$0xff]   ;;  %v961_v55 = vld [vmem:[%s1406_s1 + $0x180] ss:$24 sps:$4 sm:$0xff]  }
  0x13   :  { %637 = vmatpush1.bf16.msra.mxu0 %v925_v9  ;;  %v1012_v53 = vld [vmem:[%s1406_s1 + $0x2a8] ss:$24 sps:$4 sm:$0xff]   ;;  %v1016_v54 = vld [vmem:[%s1406_s1 + $0x27c] ss:$24 sps:$4 sm:$0xff]   ;;  %v1018_v59 = vld [vmem:[%s1406_s1 + $0x278] ss:$24 sps:$4 sm:$0xff]  }
  0x14   :  { %638 = vmatprep.subr.bf16.mxu0 %v926_v10  ;;  %678 = vmatpush1.bf16.msra.mxu1 %v976_v29  ;;  %v16_v57 = vld [vmem:[%s1407_s0 + $0x10] sm:$0xff]  ;;  %v967_v58 = vld [vmem:[%s1406_s1 + $0x164] ss:$24 sps:$4 sm:$0xff]   ;;  %v965_v62 = vld [vmem:[%s1406_s1 + $0x160] ss:$24 sps:$4 sm:$0xff]  }
  0x15   :  { %679 = vmatprep.subr.bf16.mxu1 %v980_v30  ;;  %v1022_v60 = vld [vmem:[%s1406_s1 + $0x24c] ss:$24 sps:$4 sm:$0xff]   ;;  %v1259_v61 = vpack.c.bf16 %v16_v57, %v14_v56  ;;  %v1024_v0 = vld [vmem:[%s1406_s1 + $0x248] ss:$24 sps:$4 sm:$0xff]   ;;  %v1028_v1 = vld [vmem:[%s1406_s1 + $0x21c] ss:$24 sps:$4 sm:$0xff]  }
  0x16   :  { %v973_v63 = vld [vmem:[%s1406_s1 + $0x134] ss:$24 sps:$4 sm:$0xff]   ;;  %v971_v2 = vld [vmem:[%s1406_s1 + $0x130] ss:$24 sps:$4 sm:$0xff]   ;;  %v979_v3 = vld [vmem:[%s1406_s1 + $0x104] ss:$24 sps:$4 sm:$0xff]  }
  0x17   :  { %639 = vmatpush1.bf16.msra.mxu0 %v928_v11  ;;  %v1030_v4 = vld [vmem:[%s1406_s1 + $0x218] ss:$24 sps:$4 sm:$0xff]   ;;  %v1034_v5 = vld [vmem:[%s1406_s1 + $0x1ec] ss:$24 sps:$4 sm:$0xff]   ;;  %v1036_v8 = vld [vmem:[%s1406_s1 + $0x1e8] ss:$24 sps:$4 sm:$0xff]  }
  0x18   :  { %640 = vmatprep.subr.bf16.mxu0 %v929_v12  ;;  %680 = vmatpush1.bf16.msra.mxu1 %v982_v33  ;;  %v977_v6 = vld [vmem:[%s1406_s1 + $0x100] ss:$24 sps:$4 sm:$0xff]   ;;  %v985_v7 = vld [vmem:[%s1406_s1 + $0xd4] ss:$24 sps:$4 sm:$0xff]   ;;  %v983_v10 = vld [vmem:[%s1406_s1 + $0xd0] ss:$24 sps:$4 sm:$0xff]  }
  0x19   :  { %681 = vmatprep.subr.bf16.mxu1 %v986_v34  ;;  %v1040_v9 = vld [vmem:[%s1406_s1 + $0x1bc] ss:$24 sps:$4 sm:$0xff]   ;;  %v1042_v12 = vld [vmem:[%s1406_s1 + $0x1b8] ss:$24 sps:$4 sm:$0xff]   ;;  %v1046_v13 = vld [vmem:[%s1406_s1 + $0x18c] ss:$24 sps:$4 sm:$0xff]  }
  0x1a   :  { %v991_v11 = vld [vmem:[%s1406_s1 + $0xa4] ss:$24 sps:$4 sm:$0xff]   ;;  %v989_v14 = vld [vmem:[%s1406_s1 + $0xa0] ss:$24 sps:$4 sm:$0xff]   ;;  %v995_v17 = vld [vmem:[%s1406_s1 + $0x70] ss:$24 sps:$4 sm:$0xff]  }
  0x1b   :  { %641 = vmatpush1.bf16.msra.mxu0 %v931_v15  ;;  %v997_v15 = vld [vmem:[%s1406_s1 + $0x74] ss:$24 sps:$4 sm:$0xff]   ;;  %v1048_v16 = vld [vmem:[%s1406_s1 + $0x188] ss:$24 sps:$4 sm:$0xff]   ;;  %v1027_v26 = vld [vmem:[%s1406_s1 + $0x284] ss:$24 sps:$4 sm:$0xff]  }
  0x1c   :  { %642 = vmatprep.subr.bf16.mxu0 %v932_v18  ;;  %682 = vmatpush1.bf16.msra.mxu1 %v988_v37  ;;  %v1003_v18 = vld [vmem:[%s1406_s1 + $0x44] ss:$24 sps:$4 sm:$0xff]   ;;  %v1001_v19 = vld [vmem:[%s1406_s1 + $0x40] ss:$24 sps:$4 sm:$0xff]   ;;  %v1009_v20 = vld [vmem:[%s1406_s1 + $0x14] ss:$24 sps:$4 sm:$0xff]  }
  0x1d   :  { %683 = vmatprep.subr.bf16.mxu1 %v992_v38  ;;  %v1021_v24 = vld [vmem:[%s1406_s1 + $0x2b4] ss:$24 sps:$4 sm:$0xff]   ;;  %v1019_v25 = vld [vmem:[%s1406_s1 + $0x2b0] ss:$24 sps:$4 sm:$0xff]   ;;  %v1039_v30 = vld [vmem:[%s1406_s1 + $0x224] ss:$24 sps:$4 sm:$0xff]   ;;  %v118_v38 = vlaneseq }
  0x1e   :  { %v1031_v29 = vld [vmem:[%s1406_s1 + $0x250] ss:$24 sps:$4 sm:$0xff]   ;;  %v1051_v34 = vld [vmem:[%s1406_s1 + $0x1c4] ss:$24 sps:$4 sm:$0xff]  }
  0x1f   :  { %643 = vmatpush1.bf16.msra.mxu0 %v934_v22  ;;  %v1015_v22 = vld [vmem:[%s1406_s1 + $0x2e4] ss:$24 sps:$4 sm:$0xff]   ;;  %v1043_v33 = vld [vmem:[%s1406_s1 + $0x1f0] ss:$24 sps:$4 sm:$0xff]  }
  0x20   :  { %644 = vmatprep.subr.bf16.mxu0 %v935_v23  ;;  %684 = vmatpush1.bf16.msra.mxu1 %v994_v41  ;;  %v1013_v23 = vld [vmem:[%s1406_s1 + $0x2e0] ss:$24 sps:$4 sm:$0xff]   ;;  %v1052_v37 = vld [vmem:[%s1406_s1 + $0x190] ss:$24 sps:$4 sm:$0xff]  }
  0x21   :  { %685 = vmatprep.subr.bf16.mxu1 %v998_v42  ;;  %v116_v41 = vld [vmem:[%s1408_s2] sm:$0x3f] }
  0x23   :  { %645 = vmatpush2.bf16.msra.mxu0 %v937_v27  ;;  %v1025_v27 = vld [vmem:[%s1406_s1 + $0x280] ss:$24 sps:$4 sm:$0xff]  }
  0x24   :  { %646 = vmatprep.subr.bf16.mxu0 %v938_v28  ;;  %686 = vmatpush1.bf16.msra.mxu1 %v1000_v45  ;;  %v1033_v28 = vld [vmem:[%s1406_s1 + $0x254] ss:$24 sps:$4 sm:$0xff]  }
  0x25   :  { %687 = vmatprep.subr.bf16.mxu1 %v1004_v46 }
  0x27   :  { %647 = vmatpush2.bf16.msra.mxu0 %v940_v31  ;;  %v1037_v31 = vld [vmem:[%s1406_s1 + $0x220] ss:$24 sps:$4 sm:$0xff]  }
  0x28   :  { %648 = vmatprep.subr.bf16.mxu0 %v941_v32  ;;  %688 = vmatpush2.bf16.msra.mxu1 %v1006_v49  ;;  %v1045_v32 = vld [vmem:[%s1406_s1 + $0x1f4] ss:$24 sps:$4 sm:$0xff]  }
  0x29   :  { %689 = vmatprep.subr.bf16.mxu1 %v1010_v50 }
  0x2b   :  { %649 = vmatpush2.bf16.msra.mxu0 %v943_v35  ;;  %v1049_v35 = vld [vmem:[%s1406_s1 + $0x1c0] ss:$24 sps:$4 sm:$0xff]  }
  0x2c   :  { %650 = vmatprep.subr.bf16.mxu0 %v944_v36  ;;  %690 = vmatpush2.bf16.msra.mxu1 %v1012_v53  ;;  %v1054_v36 = vld [vmem:[%s1406_s1 + $0x194] ss:$24 sps:$4 sm:$0xff]  }
  0x2d   :  { %691 = vmatprep.subr.bf16.mxu1 %v1016_v54 }
  0x2f   :  { %651 = vmatpush2.bf16.msra.mxu0 %v946_v39  ;;  %v119_v39 = vshrl.u32 %v118_v38, 7 }
  0x30   :  { %652 = vmatprep.subr.bf16.mxu0 %v947_v40  ;;  %692 = vmatpush2.bf16.msra.mxu1 %v1018_v59 }
  0x31   :  { %693 = vmatprep.subr.bf16.mxu1 %v1022_v60  ;;  %v136_v40 = vsub.s32 4, %v119_v39  ;;  %v120_v45 = vsub.s32 0, %v119_v39  ;;  %v124_v46 = vsub.s32 1, %v119_v39  ;;  %v128_v59 = vsub.s32 2, %v119_v39 }
  0x32   :  { %v132_v60 = vsub.s32 3, %v119_v39 }
  0x33   :  { %653 = vmatpush2.bf16.msra.mxu0 %v949_v43  ;;  %v137_v42 = vrot.slane %v116_v41, %v136_v40  ;;  %v140_v43 = vsub.s32 5, %v119_v39 }
  0x34   :  { %654 = vmatprep.subr.bf16.mxu0 %v950_v44  ;;  %694 = vmatpush2.bf16.msra.mxu1 %v1024_v0 }
  0x35   :  { %695 = vmatprep.subr.bf16.mxu1 %v1028_v1  ;;  %v141_v44 = vrot.slane %v116_v41, %v140_v43 }
  0x37   :  { %655 = vmatpush2.bf16.msra.mxu0 %v952_v47  ;;  %v121_v47 = vrot.slane %v116_v41, %v120_v45 }
  0x38   :  { %656 = vmatprep.subr.bf16.mxu0 %v953_v48  ;;  %696 = vmatpush2.bf16.msra.mxu1 %v1030_v4  ;;  %v125_v48 = vrot.slane %v116_v41, %v124_v46 }
  0x39   :  { %697 = vmatprep.subr.bf16.mxu1 %v1034_v5 }
  0x3b   :  { %657 = vmatpush2.bf16.msra.mxu0 %v955_v51 }
  0x3c   :  { %658 = vmatprep.subr.bf16.mxu0 %v959_v52  ;;  %698 = vmatpush2.bf16.msra.mxu1 %v1036_v8 }
  0x3d   :  { %699 = vmatprep.subr.bf16.mxu1 %v1040_v9 }
  0x3f   :  { %659 = vmatpush2.bf16.msra.mxu0 %v961_v55 }
  0x40   :  { %714 = vmatprep.subr.bf16.mxu0 %v967_v58  ;;  %700 = vmatpush2.bf16.msra.mxu1 %v1042_v12 }
  0x41   :  { %701 = vmatprep.subr.bf16.mxu1 %v1046_v13 }
  0x42   :  { %661 = vmatmul.mubr.bf16.vlgmr.msra.gmra.mxu0 %v1259_v61 }
  0x43   :  { %715 = vmatpush1.bf16.msra.mxu0 %v965_v62  ;;  %746 = vmatprep.mubr.bf16.mxu0 %v1138_v21  ;;  %v1007_v21 = vld [vmem:[%s1406_s1 + $0x10] ss:$24 sps:$4 sm:$0xff]   ;;  %v133_v62 = vrot.slane %v116_v41, %v132_v60 }
  0x44   :  { %716 = vmatprep.subr.bf16.mxu0 %v973_v63  ;;  %702 = vmatpush2.bf16.msra.mxu1 %v1048_v16 }
  0x47   :  { %717 = vmatpush1.bf16.msra.mxu0 %v971_v2  ;;  %704 = vmatmul.mubr.bf16.vlgmr.msra.gmra.mxu1 %v1259_v61 }
  0x48   :  { %718 = vmatprep.subr.bf16.mxu0 %v979_v3 }
  0x4b   :  { %719 = vmatpush1.bf16.msra.mxu0 %v977_v6 }
  0x4c   :  { %720 = vmatprep.subr.bf16.mxu0 %v985_v7 }
  0x4f   :  { %721 = vmatpush1.bf16.msra.mxu0 %v983_v10 }
  0x50   :  { %722 = vmatprep.subr.bf16.mxu0 %v991_v11 }
  0x53   :  { %723 = vmatpush1.bf16.msra.mxu0 %v989_v14 }
  0x54   :  { %724 = vmatprep.subr.bf16.mxu0 %v997_v15 }
  0x57   :  { %725 = vmatpush1.bf16.msra.mxu0 %v995_v17 }
  0x58   :  { %726 = vmatprep.subr.bf16.mxu0 %v1003_v18 }
  0x5b   :  { %727 = vmatpush1.bf16.msra.mxu0 %v1001_v19 }
  0x5c   :  { %728 = vmatprep.subr.bf16.mxu0 %v1009_v20 }
  0x5f   :  { %729 = vmatpush1.bf16.msra.mxu0 %v1007_v21 }
  0x60   :  { %730 = vmatprep.subr.bf16.mxu0 %v1015_v22 }
  0x63   :  { %731 = vmatpush2.bf16.msra.mxu0 %v1013_v23 }
  0x64   :  { %732 = vmatprep.subr.bf16.mxu0 %v1021_v24 }
  0x67   :  { %733 = vmatpush2.bf16.msra.mxu0 %v1019_v25 }
  0x68   :  { %734 = vmatprep.subr.bf16.mxu0 %v1027_v26 }
  0x6b   :  { %735 = vmatpush2.bf16.msra.mxu0 %v1025_v27 }
  0x6c   :  { %736 = vmatprep.subr.bf16.mxu0 %v1033_v28 }
  0x6f   :  { %737 = vmatpush2.bf16.msra.mxu0 %v1031_v29 }
  0x70   :  { %738 = vmatprep.subr.bf16.mxu0 %v1039_v30 }
  0x73   :  { %739 = vmatpush2.bf16.msra.mxu0 %v1037_v31 }
  0x74   :  { %740 = vmatprep.subr.bf16.mxu0 %v1045_v32 }
  0x77   :  { %741 = vmatpush2.bf16.msra.mxu0 %v1043_v33 }
  0x78   :  { %742 = vmatprep.subr.bf16.mxu0 %v1051_v34 }
  0x7b   :  { %743 = vmatpush2.bf16.msra.mxu0 %v1049_v35 }
  0x7c   :  { %744 = vmatprep.subr.bf16.mxu0 %v1054_v36 }
  0x7f   :  { %745 = vmatpush2.bf16.msra.mxu0 %v1052_v37 }
  0x82   :  { %747 = vmatmul.mubr.bf16.vlgmr.msra.gmra.mxu0 %v1259_v61  ;;  %v129_v61 = vrot.slane %v116_v41, %v128_v59 }
 0x102   :  { %v662_v49 = vpop.f32.mrf.mxu0 }
 0x103   :  { %v663_v50 = vadd.f32 %v662_v49, %v121_v47 }
 0x104   :  { %v664_v51 = vpop.f32.mrf.mxu0 }
 0x105   :  { %v665_v52 = vadd.f32 %v664_v51, %v125_v48 }
 0x106   :  { %v666_v53 = vpop.f32.mrf.mxu0 }
 0x107   :  { %v905_v54 = vpack.c.bf16 %v665_v52, %v663_v50  ;;  %v667_v56 = vadd.f32 %v666_v53, %v121_v47  ;;  %v705_v63 = vpop.f32.mrf.mxu1 }
 0x108   :  { %v668_v55 = vpop.f32.mrf.mxu0  ;;  %v706_v0 = vadd.f32 %v705_v63, %v129_v61 }
 0x109   :  { %793 = vst [vmem:[%s1409_s3] sm:$0xff] %v905_v54  ;;  %v669_v57 = vadd.f32 %v668_v55, %v125_v48  ;;  %v707_v1 = vpop.f32.mrf.mxu1 }
 0x10a   :  { %v708_v2 = vadd.f32 %v707_v1, %v133_v62 }
 0x10b   :  { %v908_v58 = vpack.c.bf16 %v669_v57, %v667_v56  ;;  %v709_v3 = vpop.f32.mrf.mxu1 }
 0x10c   :  { %v906_v4 = vpack.c.bf16 %v708_v2, %v706_v0  ;;  %v710_v5 = vadd.f32 %v709_v3, %v129_v61 }
 0x10d   :  { %796 = vst [vmem:[%s1409_s3 + $0x18] sm:$0xff] %v908_v58  ;;  %v711_v6 = vpop.f32.mrf.mxu1 }
 0x10e   :  { %794 = vst [vmem:[%s1409_s3 + $0x8] sm:$0xff] %v906_v4  ;;  %v712_v7 = vadd.f32 %v711_v6, %v133_v62 }
 0x110   :  { %v909_v8 = vpack.c.bf16 %v712_v7, %v710_v5 }
 0x112   :  { %797 = vst [vmem:[%s1409_s3 + $0x20] sm:$0xff] %v909_v8 }
 0x142   :  { %v748_v9 = vpop.f32.mrf.mxu0 }
 0x143   :  { %v749_v11 = vadd.f32 %v748_v9, %v137_v42 }
 0x144   :  { %v750_v10 = vpop.f32.mrf.mxu0 }
 0x145   :  { %v751_v12 = vadd.f32 %v750_v10, %v141_v44 }
 0x146   :  { %v752_v13 = vpop.f32.mrf.mxu0 }
 0x147   :  { %v907_v14 = vpack.c.bf16 %v751_v12, %v749_v11  ;;  %v753_v16 = vadd.f32 %v752_v13, %v137_v42 }
 0x148   :  { %v754_v15 = vpop.f32.mrf.mxu0 }
 0x149   :  { %795 = vst [vmem:[%s1409_s3 + $0x10] sm:$0xff] %v907_v14  ;;  %v755_v17 = vadd.f32 %v754_v15, %v141_v44 }
 0x14b   :  { %v910_v18 = vpack.c.bf16 %v755_v17, %v753_v16 }
 0x14d   :  { %798 = vst [vmem:[%s1409_s3 + $0x28] sm:$0xff] %v910_v18 }

// kernel: transformer_decoder_forward.23
= control target key start
LH: loop header
LB: loop body
LE: loop exit
PB: predicated region body
PF: predicated region fallthrough
CT: control target
= control target key end

     0   :  { %s483_s1 = inlined_call_operand.vmem [shape: bf16[256,256], index: 1, kind: input, shape index: {}]   ;;  %s484_s0 = inlined_call_operand.vmem [shape: f32[16,256], index: 0, kind: input, shape index: {}]   ;;  %s485_s2 = inlined_call_operand.vmem [shape: bf16[16,256], index: 2, kind: output, shape index: {}]  }
   0x1   :  { %v306_v0 = vld [vmem:[%s483_s1 + $0x74] ss:$8 sps:$4 sm:$0xff]   ;;  %v308_v1 = vld [vmem:[%s483_s1 + $0x70] ss:$8 sps:$4 sm:$0xff]   ;;  %v309_v2 = vld [vmem:[%s483_s1 + $0x64] ss:$8 sps:$4 sm:$0xff]  }
   0x2   :  { %209 = vmatprep.subr.bf16.mxu0 %v306_v0  ;;  %v311_v3 = vld [vmem:[%s483_s1 + $0x60] ss:$8 sps:$4 sm:$0xff]   ;;  %v312_v4 = vld [vmem:[%s483_s1 + $0x54] ss:$8 sps:$4 sm:$0xff]   ;;  %v314_v5 = vld [vmem:[%s483_s1 + $0x50] ss:$8 sps:$4 sm:$0xff]  }
   0x3   :  { %210 = vmatpush1.bf16.msra.mxu0 %v308_v1  ;;  %v315_v6 = vld [vmem:[%s483_s1 + $0x44] ss:$8 sps:$4 sm:$0xff]   ;;  %v317_v7 = vld [vmem:[%s483_s1 + $0x40] ss:$8 sps:$4 sm:$0xff]   ;;  %v318_v8 = vld [vmem:[%s483_s1 + $0x34] ss:$8 sps:$4 sm:$0xff]  }
   0x4   :  { %211 = vmatprep.subr.bf16.mxu0 %v309_v2  ;;  %v320_v9 = vld [vmem:[%s483_s1 + $0x30] ss:$8 sps:$4 sm:$0xff]   ;;  %v321_v10 = vld [vmem:[%s483_s1 + $0x24] ss:$8 sps:$4 sm:$0xff]   ;;  %v323_v11 = vld [vmem:[%s483_s1 + $0x20] ss:$8 sps:$4 sm:$0xff]  }
   0x5   :  { %v324_v12 = vld [vmem:[%s483_s1 + $0x14] ss:$8 sps:$4 sm:$0xff]   ;;  %v12_v13 = vld [vmem:[%s484_s0 + $0x8] sm:$0xff]  ;;  %v326_v16 = vld [vmem:[%s483_s1 + $0x10] ss:$8 sps:$4 sm:$0xff]  }
   0x6   :  { %v14_v14 = vld [vmem:[%s484_s0 + $0x18] sm:$0xff]  ;;  %v327_v17 = vld [vmem:[%s483_s1 + $0x4] ss:$8 sps:$4 sm:$0xff]   ;;  %v329_v18 = vld [vmem:[%s483_s1] ss:$8 sps:$4 sm:$0xff]  }
   0x7   :  { %212 = vmatpush1.bf16.msra.mxu0 %v311_v3  ;;  %v16_v15 = vpack.c.bf16 %v14_v14, %v12_v13  ;;  %v330_v19 = vld [vmem:[%s483_s1 + $0xf4] ss:$8 sps:$4 sm:$0xff]   ;;  %v332_v20 = vld [vmem:[%s483_s1 + $0xf0] ss:$8 sps:$4 sm:$0xff]   ;;  %v333_v21 = vld [vmem:[%s483_s1 + $0xe4] ss:$8 sps:$4 sm:$0xff]  }
   0x8   :  { %213 = vmatprep.subr.bf16.mxu0 %v312_v4  ;;  %v335_v22 = vld [vmem:[%s483_s1 + $0xe0] ss:$8 sps:$4 sm:$0xff]   ;;  %v336_v23 = vld [vmem:[%s483_s1 + $0xd4] ss:$8 sps:$4 sm:$0xff]   ;;  %v338_v24 = vld [vmem:[%s483_s1 + $0xd0] ss:$8 sps:$4 sm:$0xff]  }
   0x9   :  { %241 = vmatprep.mubr.bf16.mxu0 %v16_v15  ;;  %v339_v25 = vld [vmem:[%s483_s1 + $0xc4] ss:$8 sps:$4 sm:$0xff]   ;;  %v341_v26 = vld [vmem:[%s483_s1 + $0xc0] ss:$8 sps:$4 sm:$0xff]   ;;  %v342_v27 = vld [vmem:[%s483_s1 + $0xb4] ss:$8 sps:$4 sm:$0xff]  }
   0xa   :  { %v344_v28 = vld [vmem:[%s483_s1 + $0xb0] ss:$8 sps:$4 sm:$0xff]   ;;  %v345_v29 = vld [vmem:[%s483_s1 + $0xa4] ss:$8 sps:$4 sm:$0xff]   ;;  %v347_v30 = vld [vmem:[%s483_s1 + $0xa0] ss:$8 sps:$4 sm:$0xff]  }
   0xb   :  { %214 = vmatpush1.bf16.msra.mxu0 %v314_v5  ;;  %v348_v31 = vld [vmem:[%s483_s1 + $0x94] ss:$8 sps:$4 sm:$0xff]   ;;  %v350_v32 = vld [vmem:[%s483_s1 + $0x90] ss:$8 sps:$4 sm:$0xff]   ;;  %v351_v33 = vld [vmem:[%s483_s1 + $0x84] ss:$8 sps:$4 sm:$0xff]  }
   0xc   :  { %215 = vmatprep.subr.bf16.mxu0 %v315_v6  ;;  %v353_v34 = vld [vmem:[%s483_s1 + $0x80] ss:$8 sps:$4 sm:$0xff]   ;;  %v13_v36 = vld [vmem:[%s484_s0 + $0x10] sm:$0xff] }
   0xd   :  { %v11_v35 = vld [vmem:[%s484_s0] sm:$0xff] }
   0xe   :  { %v15_v37 = vpack.c.bf16 %v13_v36, %v11_v35 }
   0xf   :  { %216 = vmatpush1.bf16.msra.mxu0 %v317_v7 }
  0x10   :  { %217 = vmatprep.subr.bf16.mxu0 %v318_v8 }
  0x13   :  { %218 = vmatpush1.bf16.msra.mxu0 %v320_v9 }
  0x14   :  { %219 = vmatprep.subr.bf16.mxu0 %v321_v10 }
  0x17   :  { %220 = vmatpush1.bf16.msra.mxu0 %v323_v11 }
  0x18   :  { %221 = vmatprep.subr.bf16.mxu0 %v324_v12 }
  0x1b   :  { %222 = vmatpush1.bf16.msra.mxu0 %v326_v16 }
  0x1c   :  { %223 = vmatprep.subr.bf16.mxu0 %v327_v17 }
  0x1f   :  { %224 = vmatpush1.bf16.msra.mxu0 %v329_v18 }
  0x20   :  { %225 = vmatprep.subr.bf16.mxu0 %v330_v19 }
  0x23   :  { %226 = vmatpush2.bf16.msra.mxu0 %v332_v20 }
  0x24   :  { %227 = vmatprep.subr.bf16.mxu0 %v333_v21 }
  0x27   :  { %228 = vmatpush2.bf16.msra.mxu0 %v335_v22 }
  0x28   :  { %229 = vmatprep.subr.bf16.mxu0 %v336_v23 }
  0x2b   :  { %230 = vmatpush2.bf16.msra.mxu0 %v338_v24 }
  0x2c   :  { %231 = vmatprep.subr.bf16.mxu0 %v339_v25 }
  0x2f   :  { %232 = vmatpush2.bf16.msra.mxu0 %v341_v26 }
  0x30   :  { %233 = vmatprep.subr.bf16.mxu0 %v342_v27 }
  0x33   :  { %234 = vmatpush2.bf16.msra.mxu0 %v344_v28 }
  0x34   :  { %235 = vmatprep.subr.bf16.mxu0 %v345_v29 }
  0x37   :  { %236 = vmatpush2.bf16.msra.mxu0 %v347_v30 }
  0x38   :  { %237 = vmatprep.subr.bf16.mxu0 %v348_v31 }
  0x3b   :  { %238 = vmatpush2.bf16.msra.mxu0 %v350_v32 }
  0x3c   :  { %239 = vmatprep.subr.bf16.mxu0 %v351_v33 }
  0x3f   :  { %240 = vmatpush2.bf16.msra.mxu0 %v353_v34 }
  0x42   :  { %242 = vmatmul.mubr.bf16.vlgmr.msra.gmra.mxu0 %v15_v37 }
 0x102   :  { %v243_v38 = vpop.f32.mrf.mxu0 }
 0x104   :  { %v245_v39 = vpop.f32.mrf.mxu0 }
 0x105   :  { %v304_v40 = vpack.c.bf16 %v245_v39, %v243_v38 }
 0x106   :  { %v247_v41 = vpop.f32.mrf.mxu0 }
 0x107   :  { %264 = vst [vmem:[%s485_s2] sm:$0xff] %v304_v40 }
 0x108   :  { %v249_v42 = vpop.f32.mrf.mxu0 }
 0x109   :  { %v305_v43 = vpack.c.bf16 %v249_v42, %v247_v41 }
 0x10b   :  { %265 = vst [vmem:[%s485_s2 + $0x8] sm:$0xff] %v305_v43 }

// kernel: transformer_decoder_forward.17
= control target key start
LH: loop header
LB: loop body
LE: loop exit
PB: predicated region body
PF: predicated region fallthrough
CT: control target
= control target key end

     0   :  { %s1070_s1 = inlined_call_operand.vmem [shape: bf16[512,256], index: 1, kind: input, shape index: {}]   ;;  %s1071_s0 = inlined_call_operand.vmem [shape: bf16[16,512], index: 0, kind: input, shape index: {}]   ;;  %s1072_s3 = inlined_call_operand.vmem [shape: f32[16,256], index: 3, kind: input, shape index: {}]   ;;  %s1073_s2 = inlined_call_operand.vmem [shape: f32[1,256], index: 2, kind: input, shape index: {}]   ;;  %s1074_s4 = inlined_call_operand.vmem [shape: f32[1,256], index: 4, kind: input, shape index: {}]   ;;  %s1075_s5 = inlined_call_operand.vmem [shape: f32[1,256], index: 5, kind: input, shape index: {}]   ;;  %s1076_s6 = inlined_call_operand.vmem [shape: f32[16,256], index: 6, kind: output, shape index: {}]  }
   0x1   :  { %v682_v0 = vld [vmem:[%s1070_s1 + $0x74] ss:$8 sps:$4 sm:$0xff]   ;;  %v686_v2 = vld [vmem:[%s1070_s1 + $0x70] ss:$8 sps:$4 sm:$0xff]   ;;  %v688_v4 = vld [vmem:[%s1070_s1 + $0x64] ss:$8 sps:$4 sm:$0xff]  }
   0x2   :  { %v684_v1 = vld [vmem:[%s1070_s1 + $0x174] ss:$8 sps:$4 sm:$0xff]   ;;  %431 = vmatprep.subr.bf16.mxu0 %v682_v0  ;;  %v687_v3 = vld [vmem:[%s1070_s1 + $0x170] ss:$8 sps:$4 sm:$0xff]   ;;  %v690_v5 = vld [vmem:[%s1070_s1 + $0x164] ss:$8 sps:$4 sm:$0xff]  }
   0x3   :  { %474 = vmatprep.subr.bf16.mxu1 %v684_v1  ;;  %432 = vmatpush1.bf16.msra.mxu0 %v686_v2  ;;  %v692_v6 = vld [vmem:[%s1070_s1 + $0x60] ss:$8 sps:$4 sm:$0xff]   ;;  %v694_v8 = vld [vmem:[%s1070_s1 + $0x54] ss:$8 sps:$4 sm:$0xff]   ;;  %v698_v10 = vld [vmem:[%s1070_s1 + $0x50] ss:$8 sps:$4 sm:$0xff]  }
   0x4   :  { %475 = vmatpush1.bf16.msra.mxu1 %v687_v3  ;;  %433 = vmatprep.subr.bf16.mxu0 %v688_v4  ;;  %v693_v7 = vld [vmem:[%s1070_s1 + $0x160] ss:$8 sps:$4 sm:$0xff]   ;;  %v696_v9 = vld [vmem:[%s1070_s1 + $0x154] ss:$8 sps:$4 sm:$0xff]   ;;  %v699_v11 = vld [vmem:[%s1070_s1 + $0x150] ss:$8 sps:$4 sm:$0xff]   ;;  %v527_v4 = vlaneseq }
   0x5   :  { %476 = vmatprep.subr.bf16.mxu1 %v690_v5  ;;  %v700_v12 = vld [vmem:[%s1070_s1 + $0x44] ss:$8 sps:$4 sm:$0xff]   ;;  %v704_v14 = vld [vmem:[%s1070_s1 + $0x40] ss:$8 sps:$4 sm:$0xff]   ;;  %v706_v16 = vld [vmem:[%s1070_s1 + $0x34] ss:$8 sps:$4 sm:$0xff]  }
   0x6   :  { %v702_v13 = vld [vmem:[%s1070_s1 + $0x144] ss:$8 sps:$4 sm:$0xff]   ;;  %v705_v15 = vld [vmem:[%s1070_s1 + $0x140] ss:$8 sps:$4 sm:$0xff]   ;;  %v708_v17 = vld [vmem:[%s1070_s1 + $0x134] ss:$8 sps:$4 sm:$0xff]  }
   0x7   :  { %434 = vmatpush1.bf16.msra.mxu0 %v692_v6  ;;  %v710_v18 = vld [vmem:[%s1070_s1 + $0x30] ss:$8 sps:$4 sm:$0xff]   ;;  %v712_v20 = vld [vmem:[%s1070_s1 + $0x24] ss:$8 sps:$4 sm:$0xff]   ;;  %v716_v22 = vld [vmem:[%s1070_s1 + $0x20] ss:$8 sps:$4 sm:$0xff]  }
   0x8   :  { %477 = vmatpush1.bf16.msra.mxu1 %v693_v7  ;;  %435 = vmatprep.subr.bf16.mxu0 %v694_v8  ;;  %v711_v19 = vld [vmem:[%s1070_s1 + $0x130] ss:$8 sps:$4 sm:$0xff]   ;;  %v714_v21 = vld [vmem:[%s1070_s1 + $0x124] ss:$8 sps:$4 sm:$0xff]   ;;  %v717_v23 = vld [vmem:[%s1070_s1 + $0x120] ss:$8 sps:$4 sm:$0xff]  }
   0x9   :  { %478 = vmatprep.subr.bf16.mxu1 %v696_v9  ;;  %v718_v24 = vld [vmem:[%s1070_s1 + $0x14] ss:$8 sps:$4 sm:$0xff]   ;;  %v722_v26 = vld [vmem:[%s1070_s1 + $0x10] ss:$8 sps:$4 sm:$0xff]   ;;  %v724_v28 = vld [vmem:[%s1070_s1 + $0x4] ss:$8 sps:$4 sm:$0xff]  }
   0xa   :  { %v720_v25 = vld [vmem:[%s1070_s1 + $0x114] ss:$8 sps:$4 sm:$0xff]   ;;  %v723_v27 = vld [vmem:[%s1070_s1 + $0x110] ss:$8 sps:$4 sm:$0xff]   ;;  %v726_v29 = vld [vmem:[%s1070_s1 + $0x104] ss:$8 sps:$4 sm:$0xff]  }
   0xb   :  { %436 = vmatpush1.bf16.msra.mxu0 %v698_v10  ;;  %v728_v30 = vld [vmem:[%s1070_s1] ss:$8 sps:$4 sm:$0xff]   ;;  %v730_v32 = vld [vmem:[%s1070_s1 + $0xf4] ss:$8 sps:$4 sm:$0xff]   ;;  %v734_v34 = vld [vmem:[%s1070_s1 + $0xf0] ss:$8 sps:$4 sm:$0xff]  }
   0xc   :  { %479 = vmatpush1.bf16.msra.mxu1 %v699_v11  ;;  %437 = vmatprep.subr.bf16.mxu0 %v700_v12  ;;  %v729_v31 = vld [vmem:[%s1070_s1 + $0x100] ss:$8 sps:$4 sm:$0xff]   ;;  %v732_v33 = vld [vmem:[%s1070_s1 + $0x1f4] ss:$8 sps:$4 sm:$0xff]   ;;  %v735_v35 = vld [vmem:[%s1070_s1 + $0x1f0] ss:$8 sps:$4 sm:$0xff]  }
   0xd   :  { %480 = vmatprep.subr.bf16.mxu1 %v702_v13  ;;  %v736_v36 = vld [vmem:[%s1070_s1 + $0xe4] ss:$8 sps:$4 sm:$0xff]   ;;  %v740_v38 = vld [vmem:[%s1070_s1 + $0xe0] ss:$8 sps:$4 sm:$0xff]   ;;  %v742_v40 = vld [vmem:[%s1070_s1 + $0xd4] ss:$8 sps:$4 sm:$0xff]  }
   0xe   :  { %v738_v37 = vld [vmem:[%s1070_s1 + $0x1e4] ss:$8 sps:$4 sm:$0xff]   ;;  %v741_v39 = vld [vmem:[%s1070_s1 + $0x1e0] ss:$8 sps:$4 sm:$0xff]   ;;  %v744_v41 = vld [vmem:[%s1070_s1 + $0x1d4] ss:$8 sps:$4 sm:$0xff]  }
   0xf   :  { %438 = vmatpush1.bf16.msra.mxu0 %v704_v14  ;;  %v746_v42 = vld [vmem:[%s1070_s1 + $0xd0] ss:$8 sps:$4 sm:$0xff]   ;;  %v748_v44 = vld [vmem:[%s1070_s1 + $0xc4] ss:$8 sps:$4 sm:$0xff]   ;;  %v752_v46 = vld [vmem:[%s1070_s1 + $0xc0] ss:$8 sps:$4 sm:$0xff]  }
  0x10   :  { %481 = vmatpush1.bf16.msra.mxu1 %v705_v15  ;;  %439 = vmatprep.subr.bf16.mxu0 %v706_v16  ;;  %v747_v43 = vld [vmem:[%s1070_s1 + $0x1d0] ss:$8 sps:$4 sm:$0xff]   ;;  %v750_v45 = vld [vmem:[%s1070_s1 + $0x1c4] ss:$8 sps:$4 sm:$0xff]   ;;  %v753_v48 = vld [vmem:[%s1070_s1 + $0x1c0] ss:$8 sps:$4 sm:$0xff]  }
  0x11   :  { %482 = vmatprep.subr.bf16.mxu1 %v708_v17  ;;  %v780_v47 = vld [vmem:[%s1071_s0 + $0x4] ss:$16 sps:$4 sm:$0xff]   ;;  %v783_v51 = vld [vmem:[%s1071_s0 + $0xc] ss:$16 sps:$4 sm:$0xff]   ;;  %v758_v52 = vld [vmem:[%s1070_s1 + $0xb0] ss:$8 sps:$4 sm:$0xff]  }
  0x12   :  { %v754_v49 = vld [vmem:[%s1070_s1 + $0xb4] ss:$8 sps:$4 sm:$0xff]   ;;  %463 = vmatprep.mubr.bf16.mxu0 %v780_v47  ;;  %506 = vmatprep.mubr.bf16.mxu1 %v783_v51  ;;  %v759_v53 = vld [vmem:[%s1070_s1 + $0x1b0] ss:$8 sps:$4 sm:$0xff]   ;;  %v760_v54 = vld [vmem:[%s1070_s1 + $0xa4] ss:$8 sps:$4 sm:$0xff]  }
  0x13   :  { %440 = vmatpush1.bf16.msra.mxu0 %v710_v18  ;;  %v756_v50 = vld [vmem:[%s1070_s1 + $0x1b4] ss:$8 sps:$4 sm:$0xff]   ;;  %v762_v55 = vld [vmem:[%s1070_s1 + $0x1a4] ss:$8 sps:$4 sm:$0xff]   ;;  %v764_v56 = vld [vmem:[%s1070_s1 + $0xa0] ss:$8 sps:$4 sm:$0xff]  }
  0x14   :  { %483 = vmatpush1.bf16.msra.mxu1 %v711_v19  ;;  %441 = vmatprep.subr.bf16.mxu0 %v712_v20  ;;  %v765_v57 = vld [vmem:[%s1070_s1 + $0x1a0] ss:$8 sps:$4 sm:$0xff]   ;;  %v766_v58 = vld [vmem:[%s1070_s1 + $0x94] ss:$8 sps:$4 sm:$0xff]   ;;  %v770_v60 = vld [vmem:[%s1070_s1 + $0x90] ss:$8 sps:$4 sm:$0xff]  }
  0x15   :  { %484 = vmatprep.subr.bf16.mxu1 %v714_v21  ;;  %v768_v59 = vld [vmem:[%s1070_s1 + $0x194] ss:$8 sps:$4 sm:$0xff]   ;;  %v771_v61 = vld [vmem:[%s1070_s1 + $0x190] ss:$8 sps:$4 sm:$0xff]   ;;  %v772_v62 = vld [vmem:[%s1070_s1 + $0x84] ss:$8 sps:$4 sm:$0xff]  }
  0x16   :  { %v774_v63 = vld [vmem:[%s1070_s1 + $0x184] ss:$8 sps:$4 sm:$0xff]   ;;  %v776_v0 = vld [vmem:[%s1070_s1 + $0x80] ss:$8 sps:$4 sm:$0xff]   ;;  %v528_v5 = vshrl.u32 %v527_v4, 7 }
  0x17   :  { %442 = vmatpush1.bf16.msra.mxu0 %v716_v22  ;;  %v777_v1 = vld [vmem:[%s1070_s1 + $0x180] ss:$8 sps:$4 sm:$0xff]   ;;  %v519_v22 = vld [vmem:[%s1072_s3 + $0x10] sm:$0xff] }
  0x18   :  { %485 = vmatpush1.bf16.msra.mxu1 %v717_v23  ;;  %443 = vmatprep.subr.bf16.mxu0 %v718_v24  ;;  %v778_v2 = vld [vmem:[%s1071_s0] ss:$16 sps:$4 sm:$0xff]   ;;  %v781_v3 = vld [vmem:[%s1071_s0 + $0x8] ss:$16 sps:$4 sm:$0xff]   ;;  %v1027_v6 = vsub.s32 0, %v528_v5  ;;  %v1029_v7 = vsub.s32 1, %v528_v5 }
  0x19   :  { %486 = vmatprep.subr.bf16.mxu1 %v720_v25  ;;  %v517_v10 = vld [vmem:[%s1072_s3] sm:$0xff]  ;;  %v518_v15 = vld [vmem:[%s1072_s3 + $0x8] sm:$0xff] }
  0x1a   :  { %v525_v11 = vld [vmem:[%s1073_s2] sm:$0x3] }
  0x1b   :  { %444 = vmatpush1.bf16.msra.mxu0 %v722_v26  ;;  %v530_v18 = vrot.slane %v525_v11, %v1027_v6  ;;  %v534_v19 = vrot.slane %v525_v11, %v1029_v7 }
  0x1c   :  { %487 = vmatpush1.bf16.msra.mxu1 %v723_v27  ;;  %445 = vmatprep.subr.bf16.mxu0 %v724_v28  ;;  %v520_v27 = vld [vmem:[%s1072_s3 + $0x18] sm:$0xff] }
  0x1d   :  { %488 = vmatprep.subr.bf16.mxu1 %v726_v29 }
  0x1f   :  { %446 = vmatpush1.bf16.msra.mxu0 %v728_v30 }
  0x20   :  { %489 = vmatpush1.bf16.msra.mxu1 %v729_v31  ;;  %447 = vmatprep.subr.bf16.mxu0 %v730_v32 }
  0x21   :  { %490 = vmatprep.subr.bf16.mxu1 %v732_v33 }
  0x23   :  { %448 = vmatpush2.bf16.msra.mxu0 %v734_v34 }
  0x24   :  { %491 = vmatpush2.bf16.msra.mxu1 %v735_v35  ;;  %449 = vmatprep.subr.bf16.mxu0 %v736_v36 }
  0x25   :  { %492 = vmatprep.subr.bf16.mxu1 %v738_v37 }
  0x27   :  { %450 = vmatpush2.bf16.msra.mxu0 %v740_v38 }
  0x28   :  { %493 = vmatpush2.bf16.msra.mxu1 %v741_v39  ;;  %451 = vmatprep.subr.bf16.mxu0 %v742_v40 }
  0x29   :  { %494 = vmatprep.subr.bf16.mxu1 %v744_v41 }
  0x2b   :  { %452 = vmatpush2.bf16.msra.mxu0 %v746_v42 }
  0x2c   :  { %495 = vmatpush2.bf16.msra.mxu1 %v747_v43  ;;  %453 = vmatprep.subr.bf16.mxu0 %v748_v44 }
  0x2d   :  { %496 = vmatprep.subr.bf16.mxu1 %v750_v45 }
  0x2f   :  { %454 = vmatpush2.bf16.msra.mxu0 %v752_v46 }
  0x30   :  { %497 = vmatpush2.bf16.msra.mxu1 %v753_v48  ;;  %455 = vmatprep.subr.bf16.mxu0 %v754_v49 }
  0x31   :  { %498 = vmatprep.subr.bf16.mxu1 %v756_v50 }
  0x33   :  { %456 = vmatpush2.bf16.msra.mxu0 %v758_v52 }
  0x34   :  { %499 = vmatpush2.bf16.msra.mxu1 %v759_v53  ;;  %457 = vmatprep.subr.bf16.mxu0 %v760_v54 }
  0x35   :  { %500 = vmatprep.subr.bf16.mxu1 %v762_v55 }
  0x37   :  { %458 = vmatpush2.bf16.msra.mxu0 %v764_v56 }
  0x38   :  { %501 = vmatpush2.bf16.msra.mxu1 %v765_v57  ;;  %459 = vmatprep.subr.bf16.mxu0 %v766_v58  ;;  %v574_v57 = vld [vmem:[%s1074_s4] sm:$0x3] }
  0x39   :  { %502 = vmatprep.subr.bf16.mxu1 %v768_v59  ;;  %v590_v58 = vld [vmem:[%s1075_s5] sm:$0x3]  ;;  %v579_v59 = vrot.slane %v574_v57, %v1027_v6 }
  0x3b   :  { %460 = vmatpush2.bf16.msra.mxu0 %v770_v60  ;;  %v583_v60 = vrot.slane %v574_v57, %v1029_v7 }
  0x3c   :  { %503 = vmatpush2.bf16.msra.mxu1 %v771_v61  ;;  %461 = vmatprep.subr.bf16.mxu0 %v772_v62  ;;  %v595_v62 = vrot.slane %v590_v58, %v1027_v6 }
  0x3d   :  { %504 = vmatprep.subr.bf16.mxu1 %v774_v63  ;;  %v599_v63 = vrot.slane %v590_v58, %v1029_v7 }
  0x3f   :  { %462 = vmatpush2.bf16.msra.mxu0 %v776_v0 }
  0x40   :  { %505 = vmatpush2.bf16.msra.mxu1 %v777_v1 }
  0x42   :  { %464 = vmatmul.mubr.bf16.vlgmr.msra.gmra.mxu0 %v778_v2 }
  0x43   :  { %507 = vmatmul.mubr.bf16.vlgmr.msra.gmra.mxu1 %v781_v3 }
 0x102   :  { %v465_v8 = vpop.f32.mrf.mxu0 }
 0x103   :  { %v508_v9 = vpop.f32.mrf.mxu1 }
 0x104   :  { %v509_v12 = vadd.f32 %v508_v9, %v465_v8  ;;  %v467_v13 = vpop.f32.mrf.mxu0 }
 0x105   :  { %v510_v14 = vpop.f32.mrf.mxu1 }
 0x106   :  { %v521_v16 = vadd.f32 %v517_v10, %v509_v12  ;;  %v511_v17 = vadd.f32 %v510_v14, %v467_v13  ;;  %v469_v20 = vpop.f32.mrf.mxu0 }
 0x107   :  { %v512_v21 = vpop.f32.mrf.mxu1 }
 0x108   :  { %v522_v23 = vadd.f32 %v518_v15, %v511_v17  ;;  %v513_v24 = vadd.f32 %v512_v21, %v469_v20  ;;  %v471_v25 = vpop.f32.mrf.mxu0  ;;  %v537_v30 = vadd.f32 %v530_v18, %v521_v16 }
 0x109   :  { %v514_v26 = vpop.f32.mrf.mxu1 }
 0x10a   :  { %v523_v28 = vadd.f32 %v519_v22, %v513_v24  ;;  %v515_v29 = vadd.f32 %v514_v26, %v471_v25  ;;  %v538_v31 = vadd.f32 %v534_v19, %v522_v23 }
 0x10c   :  { %v524_v32 = vadd.f32 %v520_v27, %v515_v29  ;;  %v541_v33 = vadd.f32 %v538_v31, %v537_v30  ;;  %v539_v34 = vadd.f32 %v530_v18, %v523_v28 }
 0x10e   :  { %542 = vadd.xlane.f32.xlu0 %v541_v33  ;;  %v540_v35 = vadd.f32 %v534_v19, %v524_v32 }
 0x110   :  { %v544_v36 = vadd.f32 %v540_v35, %v539_v34 }
 0x112   :  { %545 = vadd.xlane.f32.xlu0 %v544_v36 }
 0x197   :  { %v543_v37 = vpop.xlane.xlu0 %542 }
 0x198   :  { %v548_v38 = vmul.f32 0.00390625, %v543_v37 }
 0x19a   :  { %v550_v39 = vsub.f32 %v537_v30, %v548_v38  ;;  %v551_v40 = vsub.f32 %v538_v31, %v548_v38 }
 0x19b   :  { %v546_v41 = vpop.xlane.xlu0 %545 }
 0x19c   :  { %v549_v42 = vmul.f32 0.00390625, %v546_v41  ;;  %v554_v43 = vmul.f32 %v550_v39, %v550_v39  ;;  %v555_v44 = vmul.f32 %v551_v40, %v551_v40 }
 0x19e   :  { %v552_v45 = vsub.f32 %v539_v34, %v549_v42  ;;  %v553_v46 = vsub.f32 %v540_v35, %v549_v42  ;;  %v558_v47 = vadd.f32 %v555_v44, %v554_v43 }
 0x1a0   :  { %559 = vadd.xlane.f32.xlu1 %v558_v47  ;;  %v556_v48 = vmul.f32 %v552_v45, %v552_v45  ;;  %v557_v49 = vmul.f32 %v553_v46, %v553_v46 }
 0x1a2   :  { %v561_v50 = vadd.f32 %v557_v49, %v556_v48 }
 0x1a4   :  { %562 = vadd.xlane.f32.xlu1 %v561_v50 }
 0x229   :  { %v560_v51 = vpop.xlane.xlu1 %559 }
 0x22a   :  { %v564_v52 = vmul.f32 0.00390625, %v560_v51 }
 0x22c   :  { %v566_v53 = vadd.f32 1e-05, %v564_v52 }
 0x22d   :  { %v563_v54 = vpop.xlane.xlu1 %562 }
 0x22e   :  { %784 = vrsqrt.f32 %v566_v53  ;;  %v565_v55 = vmul.f32 0.00390625, %v563_v54 }
 0x230   :  { %v567_v56 = vadd.f32 1e-05, %v565_v55 }
 0x232   :  { %786 = vrsqrt.f32 %v567_v56 }
 0x23b   :  { %v785_v61 = vpop.eup %784 }
 0x23c   :  { %v570_v0 = vmul.f32 %v785_v61, %v550_v39  ;;  %v571_v1 = vmul.f32 %v785_v61, %v551_v40 }
 0x23e   :  { %v586_v2 = vmul.f32 %v579_v59, %v570_v0  ;;  %v587_v3 = vmul.f32 %v583_v60, %v571_v1 }
 0x23f   :  { %v787_v4 = vpop.eup %786 }
 0x240   :  { %v602_v5 = vadd.f32 %v595_v62, %v586_v2  ;;  %v603_v8 = vadd.f32 %v599_v63, %v587_v3  ;;  %v572_v9 = vmul.f32 %v787_v4, %v552_v45  ;;  %v573_v10 = vmul.f32 %v787_v4, %v553_v46 }
 0x242   :  { %606 = vst [vmem:[%s1076_s6] sm:$0xff] %v602_v5  ;;  %607 = vst [vmem:[%s1076_s6 + $0x8] sm:$0xff] %v603_v8  ;;  %v588_v6 = vmul.f32 %v579_v59, %v572_v9  ;;  %v589_v11 = vmul.f32 %v583_v60, %v573_v10 }
 0x244   :  { %v604_v7 = vadd.f32 %v595_v62, %v588_v6  ;;  %v605_v12 = vadd.f32 %v599_v63, %v589_v11 }
 0x246   :  { %608 = vst [vmem:[%s1076_s6 + $0x10] sm:$0xff] %v604_v7  ;;  %609 = vst [vmem:[%s1076_s6 + $0x18] sm:$0xff] %v605_v12 }

// kernel: transformer_decoder_forward.24
= control target key start
LH: loop header
LB: loop body
LE: loop exit
PB: predicated region body
PF: predicated region fallthrough
CT: control target
= control target key end

     0   :  { %v54_v38 = vlaneseq  ;;  %s506_s1 = inlined_call_operand.vmem [shape: bf16[256,256], index: 1, kind: input, shape index: {}]   ;;  %s507_s0 = inlined_call_operand.vmem [shape: f32[16,256], index: 0, kind: input, shape index: {}]   ;;  %s508_s2 = inlined_call_operand.vmem [shape: f32[1,256], index: 2, kind: input, shape index: {}]   ;;  %s509_s3 = inlined_call_operand.vmem [shape: bf16[16,256], index: 3, kind: output, shape index: {}]  }
   0x1   :  { %v321_v0 = vld [vmem:[%s506_s1 + $0x74] ss:$8 sps:$4 sm:$0xff]   ;;  %v323_v1 = vld [vmem:[%s506_s1 + $0x70] ss:$8 sps:$4 sm:$0xff]   ;;  %v324_v2 = vld [vmem:[%s506_s1 + $0x64] ss:$8 sps:$4 sm:$0xff]  }
   0x2   :  { %224 = vmatprep.subr.bf16.mxu0 %v321_v0  ;;  %v326_v3 = vld [vmem:[%s506_s1 + $0x60] ss:$8 sps:$4 sm:$0xff]   ;;  %v327_v4 = vld [vmem:[%s506_s1 + $0x54] ss:$8 sps:$4 sm:$0xff]   ;;  %v329_v5 = vld [vmem:[%s506_s1 + $0x50] ss:$8 sps:$4 sm:$0xff]  }
   0x3   :  { %225 = vmatpush1.bf16.msra.mxu0 %v323_v1  ;;  %v330_v6 = vld [vmem:[%s506_s1 + $0x44] ss:$8 sps:$4 sm:$0xff]   ;;  %v332_v7 = vld [vmem:[%s506_s1 + $0x40] ss:$8 sps:$4 sm:$0xff]   ;;  %v333_v8 = vld [vmem:[%s506_s1 + $0x34] ss:$8 sps:$4 sm:$0xff]  }
   0x4   :  { %226 = vmatprep.subr.bf16.mxu0 %v324_v2  ;;  %v335_v9 = vld [vmem:[%s506_s1 + $0x30] ss:$8 sps:$4 sm:$0xff]   ;;  %v336_v10 = vld [vmem:[%s506_s1 + $0x24] ss:$8 sps:$4 sm:$0xff]   ;;  %v338_v11 = vld [vmem:[%s506_s1 + $0x20] ss:$8 sps:$4 sm:$0xff]  }
   0x5   :  { %v339_v12 = vld [vmem:[%s506_s1 + $0x14] ss:$8 sps:$4 sm:$0xff]   ;;  %v15_v13 = vld [vmem:[%s507_s0 + $0x8] sm:$0xff]  ;;  %v341_v16 = vld [vmem:[%s506_s1 + $0x10] ss:$8 sps:$4 sm:$0xff]   ;;  %v55_v39 = vshrl.u32 %v54_v38, 7 }
   0x6   :  { %v17_v14 = vld [vmem:[%s507_s0 + $0x18] sm:$0xff]  ;;  %v342_v17 = vld [vmem:[%s506_s1 + $0x4] ss:$8 sps:$4 sm:$0xff]   ;;  %v344_v18 = vld [vmem:[%s506_s1] ss:$8 sps:$4 sm:$0xff]  }
   0x7   :  { %227 = vmatpush1.bf16.msra.mxu0 %v326_v3  ;;  %v19_v15 = vpack.c.bf16 %v17_v14, %v15_v13  ;;  %v345_v19 = vld [vmem:[%s506_s1 + $0xf4] ss:$8 sps:$4 sm:$0xff]   ;;  %v347_v20 = vld [vmem:[%s506_s1 + $0xf0] ss:$8 sps:$4 sm:$0xff]   ;;  %v348_v21 = vld [vmem:[%s506_s1 + $0xe4] ss:$8 sps:$4 sm:$0xff]  }
   0x8   :  { %228 = vmatprep.subr.bf16.mxu0 %v327_v4  ;;  %v350_v22 = vld [vmem:[%s506_s1 + $0xe0] ss:$8 sps:$4 sm:$0xff]   ;;  %v351_v23 = vld [vmem:[%s506_s1 + $0xd4] ss:$8 sps:$4 sm:$0xff]   ;;  %v353_v24 = vld [vmem:[%s506_s1 + $0xd0] ss:$8 sps:$4 sm:$0xff]  }
   0x9   :  { %256 = vmatprep.mubr.bf16.mxu0 %v19_v15  ;;  %v354_v25 = vld [vmem:[%s506_s1 + $0xc4] ss:$8 sps:$4 sm:$0xff]   ;;  %v356_v26 = vld [vmem:[%s506_s1 + $0xc0] ss:$8 sps:$4 sm:$0xff]   ;;  %v357_v27 = vld [vmem:[%s506_s1 + $0xb4] ss:$8 sps:$4 sm:$0xff]  }
   0xa   :  { %v359_v28 = vld [vmem:[%s506_s1 + $0xb0] ss:$8 sps:$4 sm:$0xff]   ;;  %v360_v29 = vld [vmem:[%s506_s1 + $0xa4] ss:$8 sps:$4 sm:$0xff]   ;;  %v362_v30 = vld [vmem:[%s506_s1 + $0xa0] ss:$8 sps:$4 sm:$0xff]  }
   0xb   :  { %229 = vmatpush1.bf16.msra.mxu0 %v329_v5  ;;  %v363_v31 = vld [vmem:[%s506_s1 + $0x94] ss:$8 sps:$4 sm:$0xff]   ;;  %v365_v32 = vld [vmem:[%s506_s1 + $0x90] ss:$8 sps:$4 sm:$0xff]   ;;  %v366_v33 = vld [vmem:[%s506_s1 + $0x84] ss:$8 sps:$4 sm:$0xff]  }
   0xc   :  { %230 = vmatprep.subr.bf16.mxu0 %v330_v6  ;;  %v368_v34 = vld [vmem:[%s506_s1 + $0x80] ss:$8 sps:$4 sm:$0xff]   ;;  %v16_v36 = vld [vmem:[%s507_s0 + $0x10] sm:$0xff]  ;;  %v56_v40 = vsub.s32 0, %v55_v39  ;;  %v60_v41 = vsub.s32 1, %v55_v39 }
   0xd   :  { %v14_v35 = vld [vmem:[%s507_s0] sm:$0xff] }
   0xe   :  { %v18_v37 = vpack.c.bf16 %v16_v36, %v14_v35  ;;  %v52_v42 = vld [vmem:[%s508_s2] sm:$0x3] }
   0xf   :  { %231 = vmatpush1.bf16.msra.mxu0 %v332_v7  ;;  %v57_v43 = vrot.slane %v52_v42, %v56_v40  ;;  %v61_v44 = vrot.slane %v52_v42, %v60_v41 }
  0x10   :  { %232 = vmatprep.subr.bf16.mxu0 %v333_v8 }
  0x13   :  { %233 = vmatpush1.bf16.msra.mxu0 %v335_v9 }
  0x14   :  { %234 = vmatprep.subr.bf16.mxu0 %v336_v10 }
  0x17   :  { %235 = vmatpush1.bf16.msra.mxu0 %v338_v11 }
  0x18   :  { %236 = vmatprep.subr.bf16.mxu0 %v339_v12 }
  0x1b   :  { %237 = vmatpush1.bf16.msra.mxu0 %v341_v16 }
  0x1c   :  { %238 = vmatprep.subr.bf16.mxu0 %v342_v17 }
  0x1f   :  { %239 = vmatpush1.bf16.msra.mxu0 %v344_v18 }
  0x20   :  { %240 = vmatprep.subr.bf16.mxu0 %v345_v19 }
  0x23   :  { %241 = vmatpush2.bf16.msra.mxu0 %v347_v20 }
  0x24   :  { %242 = vmatprep.subr.bf16.mxu0 %v348_v21 }
  0x27   :  { %243 = vmatpush2.bf16.msra.mxu0 %v350_v22 }
  0x28   :  { %244 = vmatprep.subr.bf16.mxu0 %v351_v23 }
  0x2b   :  { %245 = vmatpush2.bf16.msra.mxu0 %v353_v24 }
  0x2c   :  { %246 = vmatprep.subr.bf16.mxu0 %v354_v25 }
  0x2f   :  { %247 = vmatpush2.bf16.msra.mxu0 %v356_v26 }
  0x30   :  { %248 = vmatprep.subr.bf16.mxu0 %v357_v27 }
  0x33   :  { %249 = vmatpush2.bf16.msra.mxu0 %v359_v28 }
  0x34   :  { %250 = vmatprep.subr.bf16.mxu0 %v360_v29 }
  0x37   :  { %251 = vmatpush2.bf16.msra.mxu0 %v362_v30 }
  0x38   :  { %252 = vmatprep.subr.bf16.mxu0 %v363_v31 }
  0x3b   :  { %253 = vmatpush2.bf16.msra.mxu0 %v365_v32 }
  0x3c   :  { %254 = vmatprep.subr.bf16.mxu0 %v366_v33 }
  0x3f   :  { %255 = vmatpush2.bf16.msra.mxu0 %v368_v34 }
  0x42   :  { %257 = vmatmul.mubr.bf16.vlgmr.msra.gmra.mxu0 %v18_v37 }
 0x102   :  { %v258_v45 = vpop.f32.mrf.mxu0 }
 0x103   :  { %v259_v47 = vadd.f32 %v258_v45, %v57_v43 }
 0x104   :  { %v260_v46 = vpop.f32.mrf.mxu0 }
 0x105   :  { %v261_v48 = vadd.f32 %v260_v46, %v61_v44 }
 0x106   :  { %v262_v49 = vpop.f32.mrf.mxu0 }
 0x107   :  { %v319_v50 = vpack.c.bf16 %v261_v48, %v259_v47  ;;  %v263_v52 = vadd.f32 %v262_v49, %v57_v43 }
 0x108   :  { %v264_v51 = vpop.f32.mrf.mxu0 }
 0x109   :  { %279 = vst [vmem:[%s509_s3] sm:$0xff] %v319_v50  ;;  %v265_v53 = vadd.f32 %v264_v51, %v61_v44 }
 0x10b   :  { %v320_v54 = vpack.c.bf16 %v265_v53, %v263_v52 }
 0x10d   :  { %280 = vst [vmem:[%s509_s3 + $0x8] sm:$0xff] %v320_v54 }

// kernel: transformer_decoder_forward.16
= control target key start
LH: loop header
LB: loop body
LE: loop exit
PB: predicated region body
PF: predicated region fallthrough
CT: control target
= control target key end

     0   :  { %s959_s1 = inlined_call_operand.vmem [shape: bf16[256,512], index: 1, kind: input, shape index: {}]   ;;  %s960_s0 = inlined_call_operand.vmem [shape: f32[16,256], index: 0, kind: input, shape index: {}]   ;;  %s961_s2 = inlined_call_operand.vmem [shape: f32[1,512], index: 2, kind: input, shape index: {}]   ;;  %s962_s3 = inlined_call_operand.vmem [shape: bf16[16,512], index: 3, kind: output, shape index: {}]  }
   0x1   :  { %v624_v0 = vld [vmem:[%s959_s1 + $0xe4] ss:$16 sps:$4 sm:$0xff]   ;;  %v626_v1 = vld [vmem:[%s959_s1 + $0xec] ss:$16 sps:$4 sm:$0xff]   ;;  %v628_v2 = vld [vmem:[%s959_s1 + $0xe0] ss:$16 sps:$4 sm:$0xff]  }
   0x2   :  { %426 = vmatprep.subr.bf16.mxu0 %v624_v0  ;;  %v629_v3 = vld [vmem:[%s959_s1 + $0xe8] ss:$16 sps:$4 sm:$0xff]   ;;  %469 = vmatprep.subr.bf16.mxu1 %v626_v1  ;;  %v630_v4 = vld [vmem:[%s959_s1 + $0xc4] ss:$16 sps:$4 sm:$0xff]   ;;  %v632_v5 = vld [vmem:[%s959_s1 + $0xcc] ss:$16 sps:$4 sm:$0xff]  }
   0x3   :  { %427 = vmatpush1.bf16.msra.mxu0 %v628_v2  ;;  %470 = vmatpush1.bf16.msra.mxu1 %v629_v3  ;;  %v634_v6 = vld [vmem:[%s959_s1 + $0xc0] ss:$16 sps:$4 sm:$0xff]   ;;  %v635_v7 = vld [vmem:[%s959_s1 + $0xc8] ss:$16 sps:$4 sm:$0xff]   ;;  %v636_v8 = vld [vmem:[%s959_s1 + $0xa4] ss:$16 sps:$4 sm:$0xff]  }
   0x4   :  { %428 = vmatprep.subr.bf16.mxu0 %v630_v4  ;;  %471 = vmatprep.subr.bf16.mxu1 %v632_v5  ;;  %v638_v9 = vld [vmem:[%s959_s1 + $0xac] ss:$16 sps:$4 sm:$0xff]   ;;  %v640_v10 = vld [vmem:[%s959_s1 + $0xa0] ss:$16 sps:$4 sm:$0xff]   ;;  %v641_v11 = vld [vmem:[%s959_s1 + $0xa8] ss:$16 sps:$4 sm:$0xff]  }
   0x5   :  { %v642_v12 = vld [vmem:[%s959_s1 + $0x84] ss:$16 sps:$4 sm:$0xff]   ;;  %v644_v13 = vld [vmem:[%s959_s1 + $0x8c] ss:$16 sps:$4 sm:$0xff]   ;;  %v646_v14 = vld [vmem:[%s959_s1 + $0x80] ss:$16 sps:$4 sm:$0xff]  }
   0x6   :  { %v647_v15 = vld [vmem:[%s959_s1 + $0x88] ss:$16 sps:$4 sm:$0xff]   ;;  %v648_v16 = vld [vmem:[%s959_s1 + $0x64] ss:$16 sps:$4 sm:$0xff]   ;;  %v650_v17 = vld [vmem:[%s959_s1 + $0x6c] ss:$16 sps:$4 sm:$0xff]  }
   0x7   :  { %429 = vmatpush1.bf16.msra.mxu0 %v634_v6  ;;  %472 = vmatpush1.bf16.msra.mxu1 %v635_v7  ;;  %v652_v18 = vld [vmem:[%s959_s1 + $0x60] ss:$16 sps:$4 sm:$0xff]   ;;  %v653_v19 = vld [vmem:[%s959_s1 + $0x68] ss:$16 sps:$4 sm:$0xff]   ;;  %v654_v20 = vld [vmem:[%s959_s1 + $0x44] ss:$16 sps:$4 sm:$0xff]   ;;  %v86_v6 = vlaneseq }
   0x8   :  { %430 = vmatprep.subr.bf16.mxu0 %v636_v8  ;;  %473 = vmatprep.subr.bf16.mxu1 %v638_v9  ;;  %v656_v21 = vld [vmem:[%s959_s1 + $0x4c] ss:$16 sps:$4 sm:$0xff]   ;;  %v658_v22 = vld [vmem:[%s959_s1 + $0x40] ss:$16 sps:$4 sm:$0xff]   ;;  %v659_v23 = vld [vmem:[%s959_s1 + $0x48] ss:$16 sps:$4 sm:$0xff]  }
   0x9   :  { %v660_v24 = vld [vmem:[%s959_s1 + $0x24] ss:$16 sps:$4 sm:$0xff]   ;;  %v662_v25 = vld [vmem:[%s959_s1 + $0x2c] ss:$16 sps:$4 sm:$0xff]   ;;  %v664_v26 = vld [vmem:[%s959_s1 + $0x20] ss:$16 sps:$4 sm:$0xff]  }
   0xa   :  { %v665_v27 = vld [vmem:[%s959_s1 + $0x28] ss:$16 sps:$4 sm:$0xff]   ;;  %v666_v28 = vld [vmem:[%s959_s1 + $0x4] ss:$16 sps:$4 sm:$0xff]   ;;  %v668_v29 = vld [vmem:[%s959_s1 + $0xc] ss:$16 sps:$4 sm:$0xff]  }
   0xb   :  { %431 = vmatpush1.bf16.msra.mxu0 %v640_v10  ;;  %474 = vmatpush1.bf16.msra.mxu1 %v641_v11  ;;  %v670_v30 = vld [vmem:[%s959_s1] ss:$16 sps:$4 sm:$0xff]   ;;  %v671_v31 = vld [vmem:[%s959_s1 + $0x8] ss:$16 sps:$4 sm:$0xff]   ;;  %v672_v32 = vld [vmem:[%s959_s1 + $0x1e4] ss:$16 sps:$4 sm:$0xff]  }
   0xc   :  { %432 = vmatprep.subr.bf16.mxu0 %v642_v12  ;;  %475 = vmatprep.subr.bf16.mxu1 %v644_v13  ;;  %v674_v33 = vld [vmem:[%s959_s1 + $0x1ec] ss:$16 sps:$4 sm:$0xff]   ;;  %v676_v34 = vld [vmem:[%s959_s1 + $0x1e0] ss:$16 sps:$4 sm:$0xff]   ;;  %v677_v35 = vld [vmem:[%s959_s1 + $0x1e8] ss:$16 sps:$4 sm:$0xff]  }
   0xd   :  { %v678_v36 = vld [vmem:[%s959_s1 + $0x1c4] ss:$16 sps:$4 sm:$0xff]   ;;  %v680_v37 = vld [vmem:[%s959_s1 + $0x1cc] ss:$16 sps:$4 sm:$0xff]   ;;  %v682_v38 = vld [vmem:[%s959_s1 + $0x1c0] ss:$16 sps:$4 sm:$0xff]  }
   0xe   :  { %v683_v39 = vld [vmem:[%s959_s1 + $0x1c8] ss:$16 sps:$4 sm:$0xff]   ;;  %v684_v40 = vld [vmem:[%s959_s1 + $0x1a4] ss:$16 sps:$4 sm:$0xff]   ;;  %v686_v41 = vld [vmem:[%s959_s1 + $0x1ac] ss:$16 sps:$4 sm:$0xff]  }
   0xf   :  { %433 = vmatpush1.bf16.msra.mxu0 %v646_v14  ;;  %476 = vmatpush1.bf16.msra.mxu1 %v647_v15  ;;  %v688_v42 = vld [vmem:[%s959_s1 + $0x1a0] ss:$16 sps:$4 sm:$0xff]   ;;  %v689_v43 = vld [vmem:[%s959_s1 + $0x1a8] ss:$16 sps:$4 sm:$0xff]   ;;  %v690_v44 = vld [vmem:[%s959_s1 + $0x184] ss:$16 sps:$4 sm:$0xff]  }
  0x10   :  { %434 = vmatprep.subr.bf16.mxu0 %v648_v16  ;;  %477 = vmatprep.subr.bf16.mxu1 %v650_v17  ;;  %v692_v45 = vld [vmem:[%s959_s1 + $0x18c] ss:$16 sps:$4 sm:$0xff]   ;;  %v694_v48 = vld [vmem:[%s959_s1 + $0x180] ss:$16 sps:$4 sm:$0xff]   ;;  %v695_v49 = vld [vmem:[%s959_s1 + $0x188] ss:$16 sps:$4 sm:$0xff]  }
  0x11   :  { %v15_v46 = vld [vmem:[%s960_s0 + $0x8] sm:$0xff]  ;;  %v17_v47 = vld [vmem:[%s960_s0 + $0x18] sm:$0xff]  ;;  %v696_v51 = vld [vmem:[%s959_s1 + $0x164] ss:$16 sps:$4 sm:$0xff]   ;;  %v87_v7 = vshrl.u32 %v86_v6, 7 }
  0x12   :  { %v19_v50 = vpack.c.bf16 %v17_v47, %v15_v46  ;;  %v698_v52 = vld [vmem:[%s959_s1 + $0x16c] ss:$16 sps:$4 sm:$0xff]   ;;  %v700_v53 = vld [vmem:[%s959_s1 + $0x160] ss:$16 sps:$4 sm:$0xff]   ;;  %v701_v54 = vld [vmem:[%s959_s1 + $0x168] ss:$16 sps:$4 sm:$0xff]  }
  0x13   :  { %435 = vmatpush1.bf16.msra.mxu0 %v652_v18  ;;  %478 = vmatpush1.bf16.msra.mxu1 %v653_v19  ;;  %v702_v55 = vld [vmem:[%s959_s1 + $0x144] ss:$16 sps:$4 sm:$0xff]   ;;  %v704_v56 = vld [vmem:[%s959_s1 + $0x14c] ss:$16 sps:$4 sm:$0xff]   ;;  %v706_v57 = vld [vmem:[%s959_s1 + $0x140] ss:$16 sps:$4 sm:$0xff]  }
  0x14   :  { %436 = vmatprep.subr.bf16.mxu0 %v654_v20  ;;  %479 = vmatprep.subr.bf16.mxu1 %v656_v21  ;;  %v707_v58 = vld [vmem:[%s959_s1 + $0x148] ss:$16 sps:$4 sm:$0xff]   ;;  %v708_v59 = vld [vmem:[%s959_s1 + $0x124] ss:$16 sps:$4 sm:$0xff]   ;;  %v710_v60 = vld [vmem:[%s959_s1 + $0x12c] ss:$16 sps:$4 sm:$0xff]  }
  0x15   :  { %458 = vmatprep.mubr.bf16.mxu0 %v19_v50  ;;  %501 = vmatprep.mubr.bf16.mxu1 %v19_v50  ;;  %v712_v61 = vld [vmem:[%s959_s1 + $0x120] ss:$16 sps:$4 sm:$0xff]   ;;  %v713_v62 = vld [vmem:[%s959_s1 + $0x128] ss:$16 sps:$4 sm:$0xff]   ;;  %v714_v63 = vld [vmem:[%s959_s1 + $0x104] ss:$16 sps:$4 sm:$0xff]  }
  0x16   :  { %v716_v0 = vld [vmem:[%s959_s1 + $0x10c] ss:$16 sps:$4 sm:$0xff]   ;;  %v718_v1 = vld [vmem:[%s959_s1 + $0x100] ss:$16 sps:$4 sm:$0xff]   ;;  %v719_v2 = vld [vmem:[%s959_s1 + $0x108] ss:$16 sps:$4 sm:$0xff]  }
  0x17   :  { %437 = vmatpush1.bf16.msra.mxu0 %v658_v22  ;;  %480 = vmatpush1.bf16.msra.mxu1 %v659_v23  ;;  %v14_v3 = vld [vmem:[%s960_s0] sm:$0xff]  ;;  %v16_v4 = vld [vmem:[%s960_s0 + $0x10] sm:$0xff]  ;;  %v88_v8 = vsub.s32 0, %v87_v7  ;;  %v96_v9 = vsub.s32 2, %v87_v7  ;;  %v92_v11 = vsub.s32 1, %v87_v7  ;;  %v100_v12 = vsub.s32 3, %v87_v7 }
  0x18   :  { %438 = vmatprep.subr.bf16.mxu0 %v660_v24  ;;  %481 = vmatprep.subr.bf16.mxu1 %v662_v25  ;;  %v18_v5 = vpack.c.bf16 %v16_v4, %v14_v3  ;;  %v84_v10 = vld [vmem:[%s961_s2] sm:$0xf] }
  0x19   :  { %v89_v13 = vrot.slane %v84_v10, %v88_v8  ;;  %v97_v14 = vrot.slane %v84_v10, %v96_v9  ;;  %v93_v15 = vrot.slane %v84_v10, %v92_v11  ;;  %v101_v16 = vrot.slane %v84_v10, %v100_v12 }
  0x1b   :  { %439 = vmatpush1.bf16.msra.mxu0 %v664_v26  ;;  %482 = vmatpush1.bf16.msra.mxu1 %v665_v27 }
  0x1c   :  { %440 = vmatprep.subr.bf16.mxu0 %v666_v28  ;;  %483 = vmatprep.subr.bf16.mxu1 %v668_v29 }
  0x1f   :  { %441 = vmatpush1.bf16.msra.mxu0 %v670_v30  ;;  %484 = vmatpush1.bf16.msra.mxu1 %v671_v31 }
  0x20   :  { %442 = vmatprep.subr.bf16.mxu0 %v672_v32  ;;  %485 = vmatprep.subr.bf16.mxu1 %v674_v33 }
  0x23   :  { %443 = vmatpush2.bf16.msra.mxu0 %v676_v34  ;;  %486 = vmatpush2.bf16.msra.mxu1 %v677_v35 }
  0x24   :  { %444 = vmatprep.subr.bf16.mxu0 %v678_v36  ;;  %487 = vmatprep.subr.bf16.mxu1 %v680_v37 }
  0x27   :  { %445 = vmatpush2.bf16.msra.mxu0 %v682_v38  ;;  %488 = vmatpush2.bf16.msra.mxu1 %v683_v39 }
  0x28   :  { %446 = vmatprep.subr.bf16.mxu0 %v684_v40  ;;  %489 = vmatprep.subr.bf16.mxu1 %v686_v41 }
  0x2b   :  { %447 = vmatpush2.bf16.msra.mxu0 %v688_v42  ;;  %490 = vmatpush2.bf16.msra.mxu1 %v689_v43 }
  0x2c   :  { %448 = vmatprep.subr.bf16.mxu0 %v690_v44  ;;  %491 = vmatprep.subr.bf16.mxu1 %v692_v45 }
  0x2f   :  { %449 = vmatpush2.bf16.msra.mxu0 %v694_v48  ;;  %492 = vmatpush2.bf16.msra.mxu1 %v695_v49 }
  0x30   :  { %450 = vmatprep.subr.bf16.mxu0 %v696_v51  ;;  %493 = vmatprep.subr.bf16.mxu1 %v698_v52 }
  0x33   :  { %451 = vmatpush2.bf16.msra.mxu0 %v700_v53  ;;  %494 = vmatpush2.bf16.msra.mxu1 %v701_v54 }
  0x34   :  { %452 = vmatprep.subr.bf16.mxu0 %v702_v55  ;;  %495 = vmatprep.subr.bf16.mxu1 %v704_v56 }
  0x37   :  { %453 = vmatpush2.bf16.msra.mxu0 %v706_v57  ;;  %496 = vmatpush2.bf16.msra.mxu1 %v707_v58 }
  0x38   :  { %454 = vmatprep.subr.bf16.mxu0 %v708_v59  ;;  %497 = vmatprep.subr.bf16.mxu1 %v710_v60 }
  0x3b   :  { %455 = vmatpush2.bf16.msra.mxu0 %v712_v61  ;;  %498 = vmatpush2.bf16.msra.mxu1 %v713_v62 }
  0x3c   :  { %456 = vmatprep.subr.bf16.mxu0 %v714_v63  ;;  %499 = vmatprep.subr.bf16.mxu1 %v716_v0 }
  0x3f   :  { %457 = vmatpush2.bf16.msra.mxu0 %v718_v1  ;;  %500 = vmatpush2.bf16.msra.mxu1 %v719_v2 }
  0x42   :  { %459 = vmatmul.mubr.bf16.vlgmr.msra.gmra.mxu0 %v18_v5  ;;  %502 = vmatmul.mubr.bf16.vlgmr.msra.gmra.mxu1 %v18_v5 }
 0x102   :  { %v460_v17 = vpop.f32.mrf.mxu0  ;;  %v503_v18 = vpop.f32.mrf.mxu1 }
 0x103   :  { %v461_v19 = vadd.f32 %v460_v17, %v89_v13  ;;  %v504_v20 = vadd.f32 %v503_v18, %v97_v14 }
 0x104   :  { %v462_v21 = vpop.f32.mrf.mxu0  ;;  %v505_v22 = vpop.f32.mrf.mxu1 }
 0x105   :  { %v463_v23 = vadd.f32 %v462_v21, %v93_v15  ;;  %v506_v24 = vadd.f32 %v505_v22, %v101_v16  ;;  %v512_v27 = vmax.f32 %v461_v19, 0.0  ;;  %v514_v28 = vmax.f32 %v504_v20, 0.0 }
 0x106   :  { %v464_v25 = vpop.f32.mrf.mxu0  ;;  %v507_v26 = vpop.f32.mrf.mxu1 }
 0x107   :  { %v513_v29 = vmax.f32 %v463_v23, 0.0  ;;  %v515_v30 = vmax.f32 %v506_v24, 0.0  ;;  %v465_v31 = vadd.f32 %v464_v25, %v89_v13  ;;  %v508_v32 = vadd.f32 %v507_v26, %v97_v14 }
 0x108   :  { %v466_v33 = vpop.f32.mrf.mxu0  ;;  %v509_v34 = vpop.f32.mrf.mxu1 }
 0x109   :  { %v620_v35 = vpack.c.bf16 %v513_v29, %v512_v27  ;;  %v621_v36 = vpack.c.bf16 %v515_v30, %v514_v28  ;;  %v467_v37 = vadd.f32 %v466_v33, %v93_v15  ;;  %v510_v38 = vadd.f32 %v509_v34, %v101_v16 }
 0x10a   :  { %v516_v39 = vmax.f32 %v465_v31, 0.0  ;;  %v518_v40 = vmax.f32 %v508_v32, 0.0 }
 0x10b   :  { %544 = vst [vmem:[%s962_s3] sm:$0xff] %v620_v35  ;;  %545 = vst [vmem:[%s962_s3 + $0x8] sm:$0xff] %v621_v36  ;;  %v517_v41 = vmax.f32 %v467_v37, 0.0  ;;  %v519_v42 = vmax.f32 %v510_v38, 0.0 }
 0x10d   :  { %v622_v43 = vpack.c.bf16 %v517_v41, %v516_v39  ;;  %v623_v44 = vpack.c.bf16 %v519_v42, %v518_v40 }
 0x10f   :  { %546 = vst [vmem:[%s962_s3 + $0x10] sm:$0xff] %v622_v43  ;;  %547 = vst [vmem:[%s962_s3 + $0x18] sm:$0xff] %v623_v44 }

// kernel: transformer_decoder_forward.25
= control target key start
LH: loop header
LB: loop body
LE: loop exit
PB: predicated region body
PF: predicated region fallthrough
CT: control target
= control target key end

     0   :  { %8 = vsyncpa [#allocation3], 0  ;;  %s1235_s0 = inlined_call_operand.vmem [shape: bf16[2,8,256], index: 0, kind: input, shape index: {}]   ;;  %s1236_s1 = inlined_call_operand.vmem [shape: bf16[2,8,256], index: 1, kind: input, shape index: {}]   ;;  %s1237_s2 = inlined_call_operand.vmem [shape: bf16[256,128], index: 2, kind: input, shape index: {}]   ;;  %s1238_s3 = inlined_call_operand.hbm [shape: f32[2,8,8,128], index: 3, kind: output, shape index: {}]  }
   0x1   :  { %10 = vsyncpa [#allocation3 + $0x1], 0  ;;  %s1053_s12 = smov 0   ;;  %s1055_s13 = smov 0  }
   0x2   :  { %s1057_s14 = smov 0   ;;  %s1059_s15 = smov 0  }
   0x3   :  { %s1061_s16 = smov 0   ;;  %s1063_s17 = smov 0  }
   0x4 LB: > { %s754_s18 = sadd.s32 4294967295, %s1027_s17   ;;  %s755_s19 = sadd.s32 4294967294, %s1027_s17   ;;  %s1027_s17 = sphi %s1063_s17, %s16_s17   ;;  %s1023_s16 = sphi %s1061_s16, %s1245_s16   ;;  %s1019_s15 = sphi %s1059_s15, %s1244_s15   ;;  %s1015_s14 = sphi %s1057_s14, %s1243_s14   ;;  %s1011_s13 = sphi %s1055_s13, %s1242_s13   ;;  %s1007_s12 = sphi %s1053_s12, %s1241_s12  }
   0x5   : > { %s35_s20 = sadd.s32 1, %s1023_s16  ;;  %s126_s21 = sadd.s32 1, %s1015_s14 }
   0x6   : > { %p37_p0 = scmp.ge.s32.totalorder %s35_s20, 2  ;;  %p136_p1 = scmp.ne.s32.totalorder %s1015_s14, %s1011_s13 }
   0x7   : > { %p137_p2 = scmp.eq.s32.totalorder %s754_s18, 1  ;;  %p142_p3 = scmp.ne.s32.totalorder %s1011_s13, %s1007_s12 }
   0x8   : > { %s1247_s20 = smov (%p37_p0, %s35_s20), 0  ;;  %p143_p5 = scmp.eq.s32.totalorder %s755_s19, 1 }
   0x9   : > { %p1093_p4 = por %p137_p2, %p136_p1  ;;  %s119_s23 = ssub.s32 %s1023_s16, %s1247_s20 }
   0xa   : > { %p759_p6 = scmp.ge.s32.totalorder %s1027_s17, 1  ;;  %p124_p7 = scmp.eq.s32.totalorder %s119_s23, 0 }
   0xb   : > { %p1100_p8 = por %p143_p5, %p142_p3  ;;  %p188_p9 = scmp.lt.s32.totalorder %s1027_s17, 3 }
   0xc   : > { %s1106_s25 = scalar_select %p124_p7, %s1015_s14, %s126_s21  }
   0xd   : > { %p189_p10 = pnand %p759_p6, %p188_p9 }
   0xe   : > { %p225_p11 = scmp.lt.s32.totalorder (!%p189_p10), %s1019_s15, 1  ;;  %s222_s5 = sand.u32 (!%p189_p10), 1, %s1011_s13  }
   0xf   : > { %192 = sbr.rel (%p189_p10) target bundleno = 283 (0x11b), region = 32  ;;  %s760_s6 = sshll.u32 (!%p189_p10), %s222_s5, 6 }
  0x10   : > { %s224_s7 = scalar_lea.vmem (!%p189_p10), [#allocation2], %s760_s6  ;;  %s788_s8 = sshll.u32 (!%p189_p10), %s1019_s15, 10 }
  0x11   : > { %s1184_s18 = scalar_lea.hbm (!%p189_p10), %s1238_s3, %s788_s8  ;;  %s1030_s23 = smov (!%p189_p10), [#allocation2]  }
  0x12   : > { %s955_s26 = sshll.u32 (!%p189_p10), %s1030_s23, 4  ;;  %s956_s26 = int_to_ptr.vmem [resolvable:$false] %s955_s26 }
  0x13   : > { %s957_s27 = scalar_lea.vmem (!%p189_p10), %s956_s26, 2048 }
  0x14   : > { %v903_v0 = vld [vmem:[%s1237_s2 + $0x78] sm:$0xff]   ;;  %v905_v2 = vld [vmem:[%s1237_s2 + $0x70] sm:$0xff]   ;;  %v907_v4 = vld [vmem:[%s1237_s2 + $0x68] sm:$0xff]   ;;  %s1125_s9 = scalar_select %p225_p11, %s1019_s15, 1  ;;  %v258_v9 = vlaneseq  ;;  %v1029_v15 = vmov 1966171168  }
  0x15   : > { %v904_v1 = vld [vmem:[%s1237_s2 + $0x38] sm:$0xff]   ;;  %789 = vmatprep.subr.bf16.mxu0 %v903_v0  ;;  %829 = vmatprep.subr.bf16.mxu1 %v903_v0  ;;  %v906_v3 = vld [vmem:[%s1237_s2 + $0x30] sm:$0xff]   ;;  %v908_v5 = vld [vmem:[%s1237_s2 + $0x28] sm:$0xff]   ;;  %v256_v16 = vunpack.c.l.s4 %v1029_v15  ;;  %s1190_s15 = scalar_lea.sflag [#allocation3], %s222_s5 }
  0x16   : > { %790 = vmatpush3.bf16.msra.mxu0 %v904_v1  ;;  %837 = vmatpush3.bf16.msra.mxu1 %v904_v1  ;;  %v909_v6 = vld [vmem:[%s1237_s2 + $0x60] sm:$0xff]   ;;  %s786_s21 = sshll.u32 %s1125_s9, 3  ;;  %v911_v8 = vld [vmem:[%s1237_s2 + $0x58] sm:$0xff]   ;;  %v913_v11 = vld [vmem:[%s1237_s2 + $0x50] sm:$0xff]   ;;  %v259_v17 = vshrl.u32 %v258_v9, 7  ;;  %s641_s9 = sshll.u32 %s224_s7, 4  ;;  %s1186_s9 = int_to_ptr.vmem [resolvable:$true] %s641_s9 }
  0x17   : > { %791 = vmatprep.subr.bf16.mxu0 %v905_v2  ;;  %830 = vmatprep.subr.bf16.mxu1 %v905_v2  ;;  %v910_v7 = vld [vmem:[%s1237_s2 + $0x20] sm:$0xff]   ;;  %s233_s4 = scalar_lea.vmem %s1235_s0, %s786_s21  ;;  %v912_v10 = vld [vmem:[%s1237_s2 + $0x18] sm:$0xff]   ;;  %v914_v18 = vld [vmem:[%s1237_s2 + $0x10] sm:$0xff]   ;;  %s238_s19 = scalar_lea.vmem %s1236_s1, %s786_s21  ;;  %v257_v21 = vunpack.c.0.s8 %v256_v16 }
  0x18   : > { %v245_v12 = vld [vmem:[%s233_s4] sm:$0xff]  ;;  %v915_v19 = vld [vmem:[%s1237_s2 + $0x48] sm:$0xff]   ;;  %v309_v28 = vsub.s32 1, %v259_v17  ;;  %v1164_v31 = vsub.s32 0, %v259_v17  ;;  %p958_p1 = scmp.lt.s32.totalorder %s1186_s9, %s956_s26 }
  0x19   : > { %v246_v13 = vunpack.c.l.bf16 %v245_v12  ;;  %v247_v14 = vunpack.c.h.bf16 %v245_v12  ;;  %v248_v23 = vld [vmem:[%s238_s19] sm:$0xff]  ;;  %v260_v24 = vsub.s32 %v257_v21, %v259_v17  ;;  %v916_v25 = vld [vmem:[%s1237_s2 + $0x8] sm:$0xff]   ;;  %s951_s19 = scalar_lea.vmem %s1186_s9, 1024 }
  0x1a   : > { %792 = vmatpush3.bf16.msra.mxu0 %v906_v3  ;;  %838 = vmatpush3.bf16.msra.mxu1 %v906_v3  ;;  %v917_v26 = vld [vmem:[%s1237_s2 + $0x40] sm:$0xff]   ;;  %v250_v30 = vunpack.c.h.bf16 %v248_v23  ;;  %v249_v37 = vunpack.c.l.bf16 %v248_v23  ;;  %p952_p12 = scmp.ne.s32.totalorder %s1186_s9, %s951_s19  ;;  %p959_p2 = scmp.lt.s32.totalorder %s957_s27, %s951_s19 }
  0x1b   : > { %793 = vmatprep.subr.bf16.mxu0 %v907_v4  ;;  %831 = vmatprep.subr.bf16.mxu1 %v907_v4  ;;  %v253_v20 = vcombine.low %v246_v13, %v247_v14  ;;  %v254_v22 = vcombine.high %v246_v13, %v247_v14  ;;  %v918_v36 = vld [vmem:[%s1237_s2] sm:$0xff]  }
  0x1c   : > { %p953_p13 = pnand %p952_p12, %p1093_p4  ;;  %p960_p3 = por %p959_p2, %p958_p1 }
  0x1d   : > { %v261_v27 = vrot.slane %v253_v20, %v260_v24  ;;  %v268_v29 = vrot.slane %v254_v22, %v260_v24 }
  0x1e   : > { %794 = vmatpush3.bf16.msra.mxu0 %v908_v5  ;;  %839 = vmatpush3.bf16.msra.mxu1 %v908_v5  ;;  %p954_p0 = pneg %p953_p13 }
  0x1f   : > { %795 = vmatprep.subr.bf16.mxu0 %v909_v6  ;;  %832 = vmatprep.subr.bf16.mxu1 %v909_v6  ;;  %v269_v32 = vcombine.high %v261_v27, %v261_v27  ;;  %v277_v33 = vrot.slane %v261_v27, %v260_v24  ;;  %v270_v34 = vcombine.high %v268_v29, %v268_v29 }
  0x20   : > { %v284_v35 = vrot.slane %v268_v29, %v260_v24  ;;  %p961_p5 = pnand %p960_p3, %p954_p0 }
  0x21   : > { %v291_v38 = vrot.slane %v269_v32, %v260_v24  ;;  %v310_v39 = vrot.slane %v277_v33, %v309_v28  ;;  %v298_v40 = vrot.slane %v270_v34, %v260_v24  ;;  %v306_v42 = vrot.slane %v277_v33, %v1164_v31 }
  0x22   : > { %796 = vmatpush3.bf16.msra.mxu0 %v910_v7  ;;  %840 = vmatpush3.bf16.msra.mxu1 %v910_v7  ;;  %v342_v41 = vrot.slane %v284_v35, %v309_v28  ;;  %v338_v43 = vrot.slane %v284_v35, %v1164_v31  ;;  %v299_v44 = vcombine.high %v277_v33, %v277_v33 }
  0x23   : > { %797 = vmatprep.subr.bf16.mxu0 %v911_v8  ;;  %833 = vmatprep.subr.bf16.mxu1 %v911_v8  ;;  %v318_v45 = vrot.slane %v291_v38, %v309_v28  ;;  %v384_v46 = vadd.f32 %v310_v39, %v250_v30  ;;  %v350_v47 = vrot.slane %v298_v40, %v309_v28 }
  0x24   : > { %v314_v48 = vrot.slane %v291_v38, %v1164_v31  ;;  %v392_v49 = vadd.f32 %v342_v41, %v250_v30  ;;  %v346_v50 = vrot.slane %v298_v40, %v1164_v31  ;;  %v383_v53 = vadd.f32 %v306_v42, %v249_v37 }
  0x25   : > { %v386_v51 = vadd.f32 %v318_v45, %v250_v30  ;;  %919 = vtanh.f32 %v384_v46  ;;  %v394_v52 = vadd.f32 %v350_v47, %v250_v30  ;;  %v391_v55 = vadd.f32 %v338_v43, %v249_v37 }
  0x26   : > { %798 = vmatpush3.bf16.msra.mxu0 %v912_v10  ;;  %841 = vmatpush3.bf16.msra.mxu1 %v912_v10  ;;  %921 = vtanh.f32 %v392_v49  ;;  %v385_v54 = vadd.f32 %v314_v48, %v249_v37  ;;  %v301_v56 = vcombine.high %v291_v38, %v291_v38  ;;  %v326_v57 = vrot.slane %v299_v44, %v309_v28 }
  0x27   : > { %799 = vmatprep.subr.bf16.mxu0 %v913_v11  ;;  %834 = vmatprep.subr.bf16.mxu1 %v913_v11  ;;  %923 = vtanh.f32 %v386_v51  ;;  %v300_v58 = vcombine.high %v284_v35, %v284_v35  ;;  %v302_v59 = vcombine.high %v298_v40, %v298_v40  ;;  %v393_v60 = vadd.f32 %v346_v50, %v249_v37 }
  0x28   : > { %925 = vtanh.f32 %v394_v52  ;;  %v334_v61 = vrot.slane %v301_v56, %v309_v28  ;;  %v322_v62 = vrot.slane %v299_v44, %v1164_v31  ;;  %v388_v63 = vadd.f32 %v326_v57, %v250_v30 }
  0x29   : > { %927 = vtanh.f32 %v383_v53  ;;  %v358_v0 = vrot.slane %v300_v58, %v309_v28  ;;  %v366_v1 = vrot.slane %v302_v59, %v309_v28  ;;  %v330_v3 = vrot.slane %v301_v56, %v1164_v31 }
  0x2a   : > { %800 = vmatpush3.bf16.msra.mxu0 %v914_v18  ;;  %842 = vmatpush3.bf16.msra.mxu1 %v914_v18  ;;  %929 = vtanh.f32 %v385_v54  ;;  %v390_v2 = vadd.f32 %v334_v61, %v250_v30  ;;  %v354_v5 = vrot.slane %v300_v58, %v1164_v31  ;;  %v362_v7 = vrot.slane %v302_v59, %v1164_v31 }
  0x2b   : > { %801 = vmatprep.subr.bf16.mxu0 %v915_v19  ;;  %835 = vmatprep.subr.bf16.mxu1 %v915_v19  ;;  %931 = vtanh.f32 %v391_v55  ;;  %v396_v4 = vadd.f32 %v358_v0, %v250_v30  ;;  %v398_v6 = vadd.f32 %v366_v1, %v250_v30  ;;  %v387_v8 = vadd.f32 %v322_v62, %v249_v37 }
  0x2c   : > { %933 = vtanh.f32 %v393_v60  ;;  %v389_v9 = vadd.f32 %v330_v3, %v249_v37  ;;  %v395_v10 = vadd.f32 %v354_v5, %v249_v37  ;;  %v397_v11 = vadd.f32 %v362_v7, %v249_v37 }
  0x2d   : > { %935 = vtanh.f32 %v388_v63 }
  0x2e   : > { %802 = vmatpush3.bf16.msra.mxu0 %v916_v25  ;;  %843 = vmatpush3.bf16.msra.mxu1 %v916_v25  ;;  %937 = vtanh.f32 %v390_v2 }
  0x2f   : > { %803 = vmatprep.subr.bf16.mxu0 %v917_v26  ;;  %836 = vmatprep.subr.bf16.mxu1 %v917_v26  ;;  %939 = vtanh.f32 %v396_v4 }
  0x30   : > { %941 = vtanh.f32 %v398_v6 }
  0x31   : > { %943 = vtanh.f32 %v387_v8 }
  0x32   : > { %804 = vmatpush3.bf16.msra.mxu0 %v918_v36  ;;  %844 = vmatpush3.bf16.msra.mxu1 %v918_v36  ;;  %v920_v12 = vpop.eup %919  ;;  %945 = vtanh.f32 %v389_v9 }
  0x33   : > { %v922_v13 = vpop.eup %921  ;;  %947 = vtanh.f32 %v395_v10 }
  0x34   : > { %v924_v14 = vpop.eup %923  ;;  %949 = vtanh.f32 %v397_v11 }
  0x35   : > { %v926_v15 = vpop.eup %925  ;;  %v416_v16 = vpack.c.bf16 %v924_v14, %v920_v12 }
  0x36   : > { %v928_v17 = vpop.eup %927  ;;  %v420_v18 = vpack.c.bf16 %v926_v15, %v922_v13 }
  0x37   : > { %v930_v19 = vpop.eup %929  ;;  %583 = vmatprep.mubr.bf16.mxu0 %v416_v16 }
  0x38   : > { %v932_v20 = vpop.eup %931  ;;  %599 = vmatprep.mubr.bf16.mxu1 %v420_v18  ;;  %v415_v21 = vpack.c.bf16 %v930_v19, %v928_v17 }
  0x39   : > { %v934_v22 = vpop.eup %933 }
  0x3a   : > { %v936_v23 = vpop.eup %935  ;;  %584 = vmatmul.mubr.bf16.vlgmr.msra.gmra.mxu0 %v415_v21  ;;  %v419_v24 = vpack.c.bf16 %v934_v22, %v932_v20 }
  0x3b   : > { %v938_v25 = vpop.eup %937 }
  0x3c   : > { %v940_v26 = vpop.eup %939  ;;  %600 = vmatmul.mubr.bf16.vlgmr.msra.gmra.mxu1 %v419_v24  ;;  %v418_v27 = vpack.c.bf16 %v938_v25, %v936_v23 }
  0x3d   : > { %v942_v28 = vpop.eup %941 }
  0x3e   : > { %v944_v29 = vpop.eup %943  ;;  %591 = vmatprep.mubr.bf16.mxu0 %v418_v27  ;;  %v422_v30 = vpack.c.bf16 %v942_v28, %v940_v26 }
  0x3f   : > { %v946_v31 = vpop.eup %945 }
  0x40   : > { %v948_v32 = vpop.eup %947  ;;  %607 = vmatprep.mubr.bf16.mxu1 %v422_v30  ;;  %v417_v33 = vpack.c.bf16 %v946_v31, %v944_v29 }
  0x41   : > { %v950_v34 = vpop.eup %949 }
  0x42   : > { %592 = vmatmul.mubr.bf16.gmra.mxu0 %v417_v33  ;;  %v421_v35 = vpack.c.bf16 %v950_v34, %v948_v32 }
  0x44   : > { %608 = vmatmul.mubr.bf16.gmra.mxu1 %v421_v35 }
  0xfa   : > { %v805_v36 = vpop.f32.mrf.mxu0 }
  0xfc   : > { %v817_v37 = vpop.f32.mrf.mxu1  ;;  %v806_v38 = vpop.f32.mrf.mxu0 }
  0xfd   : > { %v807_v39 = vadd.f32 %v806_v38, %v805_v36 }
  0xfe   : > { %v818_v40 = vpop.f32.mrf.mxu1  ;;  %v808_v41 = vpop.f32.mrf.mxu0 }
  0xff   : > { %616 = vst [vmem:[%s224_s7] sm:$0xff] %v807_v39  ;;  %v819_v42 = vadd.f32 %v818_v40, %v817_v37 }
 0x100   : > { %v820_v43 = vpop.f32.mrf.mxu1  ;;  %v809_v44 = vpop.f32.mrf.mxu0 }
 0x101   : > { %620 = vst [vmem:[%s224_s7 + $0x20] sm:$0xff] %v819_v42  ;;  %v810_v45 = vadd.f32 %v809_v44, %v808_v41 }
 0x102   : > { %v821_v46 = vpop.f32.mrf.mxu1  ;;  %v811_v47 = vpop.f32.mrf.mxu0 }
 0x103   : > { %617 = vst [vmem:[%s224_s7 + $0x8] sm:$0xff] %v810_v45  ;;  %v822_v48 = vadd.f32 %v821_v46, %v820_v43 }
 0x104   : > { %v823_v49 = vpop.f32.mrf.mxu1  ;;  %v812_v50 = vpop.f32.mrf.mxu0 }
 0x105   : > { %621 = vst [vmem:[%s224_s7 + $0x28] sm:$0xff] %v822_v48  ;;  %v813_v51 = vadd.f32 %v812_v50, %v811_v47 }
 0x106   : > { %v824_v52 = vpop.f32.mrf.mxu1  ;;  %v814_v53 = vpop.f32.mrf.mxu0 }
 0x107   : > { %618 = vst [vmem:[%s224_s7 + $0x10] sm:$0xff] %v813_v51  ;;  %v825_v54 = vadd.f32 %v824_v52, %v823_v49 }
 0x108   : > { %v826_v55 = vpop.f32.mrf.mxu1  ;;  %v815_v56 = vpop.f32.mrf.mxu0 }
 0x109   : > { %622 = vst [vmem:[%s224_s7 + $0x30] sm:$0xff] %v825_v54  ;;  %v816_v57 = vadd.f32 %v815_v56, %v814_v53 }
 0x10a   : > { %v827_v58 = vpop.f32.mrf.mxu1 }
 0x10b   : > { %619 = vst [vmem:[%s224_s7 + $0x18] sm:$0xff] %v816_v57  ;;  %v828_v59 = vadd.f32 %v827_v58, %v826_v55 }
 0x10d   : > { %623 = vst [vmem:[%s224_s7 + $0x38] sm:$0xff] %v828_v59 }
 0x10e   : > { %964 = shalt.err (!%p961_p5)
}
 0x10f   : > { %s965_s28 = scalar_lea.hbm %s1184_s18, 1024  ;;  %s969_s30 = scalar_lea.hbm %s1238_s3, 2048 }
 0x110   : > { %p966_p6 = scmp.ne.s32.totalorder %s1184_s18, %s965_s28  ;;  %p970_p10 = scmp.lt.s32.totalorder %s1184_s18, %s1238_s3 }
 0x111   : > { %p971_p11 = scmp.lt.s32.totalorder %s969_s30, %s965_s28 }
 0x112   : > { %p967_p7 = pnand %p966_p6, %p1093_p4 }
 0x113   : > { %p972_p12 = por %p971_p11, %p970_p10 }
 0x114   : > { %p968_p9 = pneg %p967_p7 }
 0x116   : > { %p973_p13 = pnand %p972_p12, %p968_p9 }
 0x118   : > { %976 = shalt.err (!%p973_p13)
}
 0x119   : > { %s1031_s6 = smov 128   ;;  %s1032_s7 = smov 8  }
 0x11a   : > { %845 = dma.vmem_to_hbm [thread:$0]  (%p1093_p4), %s1186_s9, 1024, %s1184_s18, %s1190_s15, %s1031_s6, %s1031_s6, %s1032_s7  }
 0x11b PF: > { %p851_p0 = scmp.ge.s32.totalorder %s1027_s17, 2  ;;  %s656_s8 = sand.u32 1, %s1007_s12  }
 0x11c   : > { %s657_s10 = scalar_lea.sflag [#allocation3], %s656_s8 }
 0x11d   : > { %p848_p1 = pnand %p851_p0, %p1100_p8 }
 0x11f   : > { %p849_p2 = pneg %p848_p1 }
 0x121   : > { %1002 = dma.done.wait (%p849_p2), %s657_s10, 1024  }
 0x122   : > { %1004 = vsyncadd (%p849_p2), %s657_s10, 4294966272  ;;  %s16_s17 = sadd.s32 1, %s1027_s17   ;;  %s1241_s12 = smov %s1011_s13 }
 0x123   : > { %p13_p3 = scmp.ge.s32.totalorder %s16_s17, 4   ;;  %s1242_s13 = smov %s1015_s14 }
 0x124   : > { %s1243_s14 = smov %s1106_s25  ;;  %s1244_s15 = smov %s1023_s16 }
 0x125   : > { %s1245_s16 = smov %s1247_s20  ;;  %15 = sbr.rel (!%p13_p3) target bundleno = 4 (0x4), region = 73 }
 0x12a   :  { %662 = vsyncpa [#allocation3], 1 }
 0x12b   :  { %664 = vsyncpa [#allocation3 + $0x1], 1 }

</bundles_post_ra>
